<compile_context>
chip_gen: v6e
topology: v6e:2x2x1
jax: 0.10.0
libtpu: 0.0.40
codegen_flags: <defaults>
</compile_context>

<pallas_src>
import functools

import jax
import jax.numpy as jnp
import numpy as np
from jax.experimental import pallas as pl
from jax.experimental.pallas import tpu as pltpu

INPUT_SIZE = 2
LATENT_SIZE = 5
MLP_SIZE = 32
OUTPUT_SIZE = 1
HP = 8   # padded hidden/gate group width (LATENT_SIZE=5 -> 8 lanes)
BP = 8   # padded per-step batch rows (B=2 -> 8 sublanes)


# ---------------------------------------------------------------------------
# Weight slab layout: one (rows, 32) f32 array; every sub-block starts on an
# 8-sublane boundary and lane 0.  Entries: (row_offset, n_rows, n_cols).
# All padding regions are ZERO — the padded-lane-zero invariant of h/c/hidden
# relies on it (wih_p/whh_p padded cols, f_w1h rows 5..7, f_w3p cols 5..7,
# h_w1h rows 5..7 must stay 0).
# ---------------------------------------------------------------------------
def _make_layout():
    layout = {}
    row = 0

    def add(name, nr, nc):
        nonlocal row
        layout[name] = (row, nr, nc)
        row += ((nr + 7) // 8) * 8  # 8-sublane align each block

    for name, nr, nc in [
        ("wih_p", INPUT_SIZE + 1, 4 * HP),   # LSTM input weights, gate-padded
        ("whh_p", HP, 4 * HP),               # LSTM recurrent weights, padded
        ("lstm_b_p", 1, 4 * HP),             # b_ih + b_hh, gate-padded
        ("f_w1x", INPUT_SIZE, MLP_SIZE),     # f-MLP L1, x rows
        ("f_w1h", HP, MLP_SIZE),             # f-MLP L1, hidden rows (padded)
        ("f_b1", 1, MLP_SIZE),
        ("f_w2", MLP_SIZE, MLP_SIZE),
        ("f_b2", 1, MLP_SIZE),
        ("f_w3p", MLP_SIZE, HP),             # f-MLP L3 -> hidden (col-padded)
        ("f_b3p", 1, HP),
        ("f_wff", MLP_SIZE, MLP_SIZE),       # fused fW3 @ fW1h (delta-carry)
        ("f_cf", 1, MLP_SIZE),               # fused fb3 @ fW1h (delta-carry)
        ("h_w1h", HP, MLP_SIZE),             # h-MLP L1, hidden rows (padded)
        ("h_w1x", INPUT_SIZE, MLP_SIZE),     # h-MLP L1, x rows
        ("h_b1", 1, MLP_SIZE),
        ("h_w2", MLP_SIZE, MLP_SIZE),
        ("h_b2", 1, MLP_SIZE),
        ("h_w3", MLP_SIZE, OUTPUT_SIZE),
        ("h_b3", 1, OUTPUT_SIZE),
    ]:
        add(name, nr, nc)
    return layout, row


_LAYOUT, _SLAB_ROWS = _make_layout()
_SLAB_COLS = 32


# ---------------------------------------------------------------------------
# Kernel
# ---------------------------------------------------------------------------
def _kernel(Bp, Tp, Tx, past_ref, s0_ref, x_ref, w_ref, out_ref):
    f32 = jnp.float32
    bf16 = jnp.bfloat16
    H = LATENT_SIZE
    M = MLP_SIZE

    def bdot(a, b):
        # bf16 x bf16 -> f32: guaranteed single MXU pass on all generations.
        return jnp.dot(a.astype(bf16), b.astype(bf16),
                       preferred_element_type=f32)

    def slab(name):
        r0, nr, nc = _LAYOUT[name]
        return w_ref[r0:r0 + nr, 0:nc]

    # ---- nn.LSTM(num_layers=2) over `past`.  The module consumes h_n[0]
    # (layer-0 final hidden) and layer 0 never depends on layer 1, so the
    # layer-1 stack is dead code w.r.t. the output and is not computed. ----
    wih = slab("wih_p")                         # (IN+1, 4*HP)
    whh_b = slab("whh_p").astype(bf16)          # (HP,   4*HP), hoisted cast
    lb = slab("lstm_b_p")                       # (1,    4*HP)

    # Hoisted input projection: one batched matmul for all Tp steps.
    gx_all = bdot(past_ref[...], wih) + lb      # (Tp*Bp, 4*HP)

    # Fused gate nonlinearity constants (hoisted):
    #   sigmoid(x) = 0.5*tanh(0.5x) + 0.5  on the i/f/o lanes, tanh on g lanes
    lane4 = jax.lax.broadcasted_iota(jnp.int32, (Bp, 4 * HP), 1)
    is_g = (lane4 >= 2 * HP) & (lane4 < 3 * HP)
    g_scale = jnp.where(is_g, 1.0, 0.5).astype(f32)   # pre- and post-scale
    g_bias = jnp.where(is_g, 0.0, 0.5).astype(f32)

    h = jnp.zeros((Bp, HP), f32)
    c = jnp.zeros((Bp, HP), f32)
    for t in range(Tp):
        gates = gx_all[t * Bp:(t + 1) * Bp, :] + bdot(h, whh_b)   # aligned read
        act = jnp.tanh(gates * g_scale) * g_scale + g_bias        # 1 EUP push
        i_g = act[:, 0 * HP:1 * HP]
        f_g = act[:, 1 * HP:2 * HP]
        g_g = act[:, 2 * HP:3 * HP]
        o_g = act[:, 3 * HP:4 * HP]
        c = f_g * c + i_g * g_g        # padded lanes stay exactly 0
        h = o_g * jnp.tanh(c)

    # hidden = concat([s[:, 0], h[:, 1:H]]) -> lane-0 select (no concat).
    lane_h = jax.lax.broadcasted_iota(jnp.int32, (Bp, HP), 1)
    s0_b = jnp.broadcast_to(s0_ref[...], (Bp, HP))
    hidden0 = jnp.where(lane_h == 0, s0_b, h)                     # (Bp, HP)

    # ---- BB_RNN rollout in delta-carry form: carry a1 = hidden @ fW1h.
    #      Serial chain per step: 2 MXU matmuls (was 3). ----
    fw1x, fw1h, fb1 = slab("f_w1x"), slab("f_w1h"), slab("f_b1")
    fw2_b, fb2 = slab("f_w2").astype(bf16), slab("f_b2")
    fw3, fb3 = slab("f_w3p"), slab("f_b3p")
    wff_b = slab("f_wff").astype(bf16)          # fW3 @ fW1h, precomputed host
    cf = slab("f_cf")                           # fb3 @ fW1h, precomputed host

    x_all = x_ref[...]                          # (Tx*Bp, IN)
    fx_all = bdot(x_all, fw1x) + fb1            # (Tx*Bp, M), hoisted

    # Hoisted bias broadcasts (JAX does not CSE broadcast_in_dim).
    fb2_b = jnp.broadcast_to(fb2, (Bp, M))
    cf_b = jnp.broadcast_to(cf, (Bp, M))

    a1 = bdot(hidden0, fw1h)                    # (Bp, M)
    z2s = []
    for j in range(Tx):
        z1 = jnp.maximum(fx_all[j * Bp:(j + 1) * Bp, :] + a1, 0.0)
        z2 = jnp.maximum(bdot(z1, fw2_b) + fb2_b, 0.0)
        z2s.append(z2)
        # acc + dot(...) form -> v7x MRB in-place accumulate; no-op elsewhere.
        a1 = a1 + bdot(z2, wff_b) + cf_b

    # Reconstruct hidden_j OFF the serial chain:
    # one batched matmul + cheap 8-step prefix sum of aligned (Bp,HP) deltas.
    z2_all = jnp.concatenate(z2s, axis=0)       # (Tx*Bp, M), aligned blocks
    d_all = bdot(z2_all, fw3) + fb3             # (Tx*Bp, HP)
    hid = hidden0
    hids = []
    for j in range(Tx):
        hid = hid + d_all[j * Bp:(j + 1) * Bp, :]
        hids.append(hid)
    hid_tm = jnp.concatenate(hids, axis=0)      # (Tx*Bp, HP)

    # ---- Prediction head batched over all Tx steps (off the serial chain).
    hw1h, hw1x, hb1 = slab("h_w1h"), slab("h_w1x"), slab("h_b1")
    hw2, hb2 = slab("h_w2"), slab("h_b2")
    hw3, hb3 = slab("h_w3"), slab("h_b3")

    z = jnp.maximum(bdot(hid_tm, hw1h) + bdot(x_all, hw1x) + hb1, 0.0)
    z = jnp.maximum(bdot(z, hw2) + hb2, 0.0)
    out_ref[...] = bdot(z, hw3) + hb3           # (Tx*Bp, 1) single store


def _full_spec(shape):
    nd = len(shape)
    return pl.BlockSpec(shape, lambda i, _nd=nd: (0,) * _nd)


# ---------------------------------------------------------------------------
# Wrapper (single jitted executable: layout prep + kernel + output slice)
# ---------------------------------------------------------------------------
def _pad_time_major(a, Bp):
    """(B, T, C) batch-first -> (T*Bp, C) time-major with zero-padded rows."""
    B, T, C = a.shape
    a_tm = jnp.swapaxes(a, 0, 1)                              # (T, B, C)
    a_tm = jnp.pad(a_tm, ((0, 0), (0, Bp - B), (0, 0)))
    return a_tm.reshape(T * Bp, C).astype(jnp.float32)


@jax.jit
def bbnode_lstm_forward(past, s, x, slab):
    B, Tp, _ = past.shape
    _, Tx, _ = x.shape
    assert B <= BP, "per-step batch padding assumes B <= 8"

    past_p = _pad_time_major(past, BP)                        # (Tp*BP, IN+1)
    x_p = _pad_time_major(x, BP)                              # (Tx*BP, IN)
    s0_p = jnp.pad(s[:, 0].astype(jnp.float32), ((0, BP - B), (0, 0)))

    args = [past_p, s0_p, x_p, slab]
    out_tm = pl.pallas_call(
        functools.partial(_kernel, BP, Tp, Tx),
        out_shape=jax.ShapeDtypeStruct((Tx * BP, OUTPUT_SIZE), jnp.float32),
        grid=(1,),
        in_specs=[_full_spec(a.shape) for a in args],
        out_specs=_full_spec((Tx * BP, OUTPUT_SIZE)),
        compiler_params=pltpu.CompilerParams(
            dimension_semantics=("arbitrary",)),
        cost_estimate=pl.CostEstimate(flops=530_000, transcendentals=2_600,
                                      bytes_accessed=36_000),
    )(*args)
    # drop padded batch rows, back to batch-first (B, Tx, 1)
    return out_tm.reshape(Tx, BP, OUTPUT_SIZE)[:, :B].transpose(1, 0, 2)


# ---------------------------------------------------------------------------
# Parameters
# ---------------------------------------------------------------------------
def init_params(key):
    """Deterministic init mirroring PyTorch defaults (uniform +/-1/sqrt(fan))."""
    H, IN, M, OUT = LATENT_SIZE, INPUT_SIZE, MLP_SIZE, OUTPUT_SIZE
    keys = jax.random.split(key, 10)

    def unif(k, shape, bound):
        return jax.random.uniform(k, shape, jnp.float32, -bound, bound)

    kb = 1.0 / np.sqrt(H)
    wih = unif(keys[0], (4 * H, IN + 1), kb)     # gate order: i, f, g, o
    whh = unif(keys[1], (4 * H, H), kb)
    bih = unif(keys[2], (4 * H,), kb)
    bhh = unif(keys[3], (4 * H,), kb)

    def linear(k, fan_in, fan_out):
        kw, kbk = jax.random.split(k)
        b = 1.0 / np.sqrt(fan_in)
        return unif(kw, (fan_out, fan_in), b), unif(kbk, (fan_out,), b)

    f_w1, f_b1 = linear(keys[4], IN + H, M)
    f_w2, f_b2 = linear(keys[5], M, M)
    f_w3, f_b3 = linear(keys[6], M, H)
    h_w1, h_b1 = linear(keys[7], IN + H, M)
    h_w2, h_b2 = linear(keys[8], M, M)
    h_w3, h_b3 = linear(keys[9], M, OUT)

    params = dict(
        lstm_wih_t=wih.T, lstm_whh_t=whh.T,
        lstm_b=(bih + bhh).reshape(1, 4 * H),
        f_w1_t=f_w1.T, f_b1=f_b1.reshape(1, -1),
        f_w2_t=f_w2.T, f_b2=f_b2.reshape(1, -1),
        f_w3_t=f_w3.T, f_b3=f_b3.reshape(1, -1),
        h_w1_t=h_w1.T, h_b1=h_b1.reshape(1, -1),
        h_w2_t=h_w2.T, h_b2=h_b2.reshape(1, -1),
        h_w3_t=h_w3.T, h_b3=h_b3.reshape(1, -1),
    )
    return jax.tree.map(lambda a: jnp.asarray(a, jnp.float32), params)


def pack_params(p):
    """Pack all weights/biases into one (rows, 32) f32 slab (gate-padded).

    All padding stays ZERO (required by the in-kernel padded-lane invariant).
    Also precomputes the delta-carry fused matrices fW3@fW1h and fb3@fW1h.
    """
    H, IN = LATENT_SIZE, INPUT_SIZE
    slab = np.zeros((_SLAB_ROWS, _SLAB_COLS), np.float32)

    def put(name, arr):
        r0, nr, nc = _LAYOUT[name]
        arr = np.asarray(arr, np.float32)
        assert arr.shape[0] <= nr and arr.shape[1] <= nc, name
        slab[r0:r0 + arr.shape[0], :arr.shape[1]] = arr

    # LSTM layer-0 weights regrouped so gate k lives in aligned lanes
    # [k*HP, k*HP+H); padded columns/rows stay zero.
    wih_t = np.asarray(p["lstm_wih_t"], np.float32)   # (IN+1, 4H)
    whh_t = np.asarray(p["lstm_whh_t"], np.float32)   # (H, 4H)
    lb = np.asarray(p["lstm_b"], np.float32)          # (1, 4H)
    wih_p = np.zeros((IN + 1, 4 * HP), np.float32)
    whh_p = np.zeros((HP, 4 * HP), np.float32)
    lb_p = np.zeros((1, 4 * HP), np.float32)
    for k in range(4):
        wih_p[:, k * HP:k * HP + H] = wih_t[:, k * H:(k + 1) * H]
        whh_p[:H, k * HP:k * HP + H] = whh_t[:, k * H:(k + 1) * H]
        lb_p[:, k * HP:k * HP + H] = lb[:, k * H:(k + 1) * H]
    put("wih_p", wih_p)
    put("whh_p", whh_p)
    put("lstm_b_p", lb_p)

    fw1 = np.asarray(p["f_w1_t"], np.float32)         # (IN+H, M): [x; hidden]
    fw1h_np = fw1[IN:]                                 # (H, M)
    fw3_np = np.asarray(p["f_w3_t"], np.float32)       # (M, H)
    fb3_np = np.asarray(p["f_b3"], np.float32)         # (1, H)
    put("f_w1x", fw1[:IN])
    put("f_w1h", fw1h_np)
    put("f_b1", p["f_b1"])
    put("f_w2", p["f_w2_t"])
    put("f_b2", p["f_b2"])
    put("f_w3p", fw3_np)                               # (M, H) -> HP col-padded
    put("f_b3p", fb3_np)
    # Delta-carry fused constants (computed in f64 on host, stored f32).
    put("f_wff", (fw3_np.astype(np.float64) @ fw1h_np.astype(np.float64))
        .astype(np.float32))
    put("f_cf", (fb3_np.astype(np.float64) @ fw1h_np.astype(np.float64))
        .astype(np.float32))

    hw1 = np.asarray(p["h_w1_t"], np.float32)         # (H+IN, M): [hidden; x]
    put("h_w1h", hw1[:H])
    put("h_w1x", hw1[H:])
    put("h_b1", p["h_b1"])
    put("h_w2", p["h_w2_t"])
    put("h_b2", p["h_b2"])
    put("h_w3", p["h_w3_t"])
    put("h_b3", p["h_b3"])
    return jnp.asarray(slab)


# ---------------------------------------------------------------------------
# Pure-JAX reference (mirrors the PyTorch forward, full f32 precision)
# ---------------------------------------------------------------------------
def reference_forward(past, s, x, p):
    B, Tp, _ = past.shape
    _, Tx, _ = x.shape
    H = LATENT_SIZE
    hp = jax.lax.Precision.HIGHEST

    def dot(a, b):
        return jnp.dot(a, b, precision=hp)

    h = jnp.zeros((B, H), jnp.float32)
    c = jnp.zeros((B, H), jnp.float32)
    for t in range(Tp):
        g = dot(past[:, t], p["lstm_wih_t"]) + dot(h, p["lstm_whh_t"]) + p["lstm_b"]
        i_g = jax.nn.sigmoid(g[:, :H])
        f_g = jax.nn.sigmoid(g[:, H:2 * H])
        g_g = jnp.tanh(g[:, 2 * H:3 * H])
        o_g = jax.nn.sigmoid(g[:, 3 * H:])
        c = f_g * c + i_g * g_g
        h = o_g * jnp.tanh(c)

    hidden = jnp.concatenate([s[:, 0], h[:, 1:]], axis=-1)

    def mlp(z, pre):
        z = jax.nn.relu(dot(z, p[pre + "_w1_t"]) + p[pre + "_b1"])
        z = jax.nn.relu(dot(z, p[pre + "_w2_t"]) + p[pre + "_b2"])
        return dot(z, p[pre + "_w3_t"]) + p[pre + "_b3"]

    preds = []
    for j in range(Tx):
        xj = x[:, j]
        hidden = hidden + mlp(jnp.concatenate([xj, hidden], -1), "f")
        preds.append(mlp(jnp.concatenate([hidden, xj], -1), "h"))
    return jnp.stack(preds, axis=1)


if __name__ == "__main__":
    key = jax.random.PRNGKey(0)
    kp, kpast, ks, kx = jax.random.split(key, 4)
    params = init_params(kp)
    slab = pack_params(params)

    B, Tp, Tx = 2, 8, 8
    past = jax.random.normal(kpast, (B, Tp, INPUT_SIZE + 1), jnp.float32)
    s = jax.random.normal(ks, (B, Tx, 1), jnp.float32)
    x = jax.random.normal(kx, (B, Tx, INPUT_SIZE), jnp.float32)

    out = bbnode_lstm_forward(past, s, x, slab)
    out = jax.block_until_ready(out)

    ref = reference_forward(past, s, x, params)
    assert out.shape == (B, Tx, OUTPUT_SIZE)
    # Tolerance accounts for bf16 MXU operands (single-pass matmuls) vs the
    # HIGHEST-precision f32 reference over the 16-step recurrent chain.
    np.testing.assert_allclose(np.asarray(out), np.asarray(ref),
                               rtol=5e-2, atol=5e-2)
    print("KERNEL_OK")
</pallas_src>

<mosaic_0001>
module attributes {stable_mosaic.version = 11 : i64} {
  func.func @_kernel(%arg0: i32, %arg1: memref<64x3xf32, #tpu.memory_space<vmem>>, %arg2: memref<8x1xf32, #tpu.memory_space<vmem>>, %arg3: memref<64x2xf32, #tpu.memory_space<vmem>>, %arg4: memref<272x32xf32, #tpu.memory_space<vmem>>, %arg5: memref<64x1xf32, #tpu.memory_space<vmem>>) attributes {dimension_semantics = [#tpu.dimension_semantics<arbitrary>], iteration_bounds = array<i64: 1>, scalar_prefetch = 0 : i64, scratch_operands = 0 : i64, tpu.core_type = #tpu.core_type<tc>, window_params = [{pipeline_mode = #tpu.pipeline_mode<synchronous>, transform_indices = @transform_0, window_bounds = array<i64: 64, 3>}, {pipeline_mode = #tpu.pipeline_mode<synchronous>, transform_indices = @transform_1, window_bounds = array<i64: 8, 1>}, {pipeline_mode = #tpu.pipeline_mode<synchronous>, transform_indices = @transform_2, window_bounds = array<i64: 64, 2>}, {pipeline_mode = #tpu.pipeline_mode<synchronous>, transform_indices = @transform_3, window_bounds = array<i64: 272, 32>}, {pipeline_mode = #tpu.pipeline_mode<synchronous>, transform_indices = @transform_4, window_bounds = array<i64: 64, 1>}]} {
    %c0 = arith.constant 0 : index
    %c0_0 = arith.constant 0 : index
    %0 = vector.load %arg4[%c0, %c0_0] : memref<272x32xf32, #tpu.memory_space<vmem>>, vector<3x32xf32>
    %c8 = arith.constant 8 : index
    %c0_1 = arith.constant 0 : index
    %1 = vector.load %arg4[%c8, %c0_1] : memref<272x32xf32, #tpu.memory_space<vmem>>, vector<8x32xf32>
    %2 = arith.truncf %1 : vector<8x32xf32> to vector<8x32xbf16>
    %c16 = arith.constant 16 : index
    %c0_2 = arith.constant 0 : index
    %3 = vector.load %arg4[%c16, %c0_2] : memref<272x32xf32, #tpu.memory_space<vmem>>, vector<1x32xf32>
    %c0_3 = arith.constant 0 : index
    %c0_4 = arith.constant 0 : index
    %4 = vector.load %arg1[%c0_3, %c0_4] : memref<64x3xf32, #tpu.memory_space<vmem>>, vector<64x3xf32>
    %5 = arith.truncf %4 : vector<64x3xf32> to vector<64x3xbf16>
    %6 = arith.truncf %0 : vector<3x32xf32> to vector<3x32xbf16>
    %cst = arith.constant dense<0.000000e+00> : vector<64x32xf32>
    %7 = tpu.matmul %5, %6, %cst {dimension_numbers = #tpu.dot_dimension_numbers<[1], [0], [0], [1], [0, 0, 1, 1], [], []>} : vector<64x3xbf16>, vector<3x32xbf16>, vector<64x32xf32> -> vector<64x32xf32>
    %8 = vector.broadcast %3 : vector<1x32xf32> to vector<64x32xf32>
    %9 = arith.addf %7, %8 : vector<64x32xf32>
    %10 = tpu.iota {dimensions = array<i32: 1>} : vector<8x32xi32>
    %c16_i32 = arith.constant 16 : i32
    %11 = vector.broadcast %c16_i32 : i32 to vector<8x32xi32>
    %12 = arith.cmpi sge, %10, %11 : vector<8x32xi32>
    %c24_i32 = arith.constant 24 : i32
    %13 = vector.broadcast %c24_i32 : i32 to vector<8x32xi32>
    %14 = arith.cmpi slt, %10, %13 : vector<8x32xi32>
    %15 = arith.andi %12, %14 : vector<8x32xi1>
    %cst_5 = arith.constant 1.000000e+00 : f32
    %cst_6 = arith.constant 5.000000e-01 : f32
    %16 = vector.broadcast %cst_5 : f32 to vector<8x32xf32>
    %17 = vector.broadcast %cst_6 : f32 to vector<8x32xf32>
    %18 = arith.select %15, %16, %17 : vector<8x32xi1>, vector<8x32xf32>
    %cst_7 = arith.constant 0.000000e+00 : f32
    %cst_8 = arith.constant 5.000000e-01 : f32
    %19 = vector.broadcast %cst_7 : f32 to vector<8x32xf32>
    %20 = vector.broadcast %cst_8 : f32 to vector<8x32xf32>
    %21 = arith.select %15, %19, %20 : vector<8x32xi1>, vector<8x32xf32>
    %cst_9 = arith.constant 0.000000e+00 : f32
    %22 = vector.broadcast %cst_9 : f32 to vector<8x8xf32>
    %cst_10 = arith.constant 0.000000e+00 : f32
    %23 = vector.broadcast %cst_10 : f32 to vector<8x8xf32>
    %24 = vector.extract_strided_slice %9 {offsets = [0, 0], sizes = [8, 32], strides = [1, 1]} : vector<64x32xf32> to vector<8x32xf32>
    %25 = arith.truncf %22 : vector<8x8xf32> to vector<8x8xbf16>
    %cst_11 = arith.constant dense<0.000000e+00> : vector<8x32xf32>
    %26 = tpu.matmul %25, %2, %cst_11 {dimension_numbers = #tpu.dot_dimension_numbers<[1], [0], [0], [1], [0, 0, 1, 1], [], []>} : vector<8x8xbf16>, vector<8x32xbf16>, vector<8x32xf32> -> vector<8x32xf32>
    %27 = arith.addf %24, %26 : vector<8x32xf32>
    %28 = arith.mulf %27, %18 : vector<8x32xf32>
    %29 = math.tanh %28 : vector<8x32xf32>
    %30 = arith.mulf %29, %18 : vector<8x32xf32>
    %31 = arith.addf %30, %21 : vector<8x32xf32>
    %32 = vector.extract_strided_slice %31 {offsets = [0, 0], sizes = [8, 8], strides = [1, 1]} : vector<8x32xf32> to vector<8x8xf32>
    %33 = vector.extract_strided_slice %31 {offsets = [0, 8], sizes = [8, 8], strides = [1, 1]} : vector<8x32xf32> to vector<8x8xf32>
    %34 = vector.extract_strided_slice %31 {offsets = [0, 16], sizes = [8, 8], strides = [1, 1]} : vector<8x32xf32> to vector<8x8xf32>
    %35 = vector.extract_strided_slice %31 {offsets = [0, 24], sizes = [8, 8], strides = [1, 1]} : vector<8x32xf32> to vector<8x8xf32>
    %36 = arith.mulf %33, %23 : vector<8x8xf32>
    %37 = arith.mulf %32, %34 : vector<8x8xf32>
    %38 = arith.addf %36, %37 : vector<8x8xf32>
    %39 = math.tanh %38 : vector<8x8xf32>
    %40 = arith.mulf %35, %39 : vector<8x8xf32>
    %41 = vector.extract_strided_slice %9 {offsets = [8, 0], sizes = [8, 32], strides = [1, 1]} : vector<64x32xf32> to vector<8x32xf32>
    %42 = arith.truncf %40 : vector<8x8xf32> to vector<8x8xbf16>
    %cst_12 = arith.constant dense<0.000000e+00> : vector<8x32xf32>
    %43 = tpu.matmul %42, %2, %cst_12 {dimension_numbers = #tpu.dot_dimension_numbers<[1], [0], [0], [1], [0, 0, 1, 1], [], []>} : vector<8x8xbf16>, vector<8x32xbf16>, vector<8x32xf32> -> vector<8x32xf32>
    %44 = arith.addf %41, %43 : vector<8x32xf32>
    %45 = arith.mulf %44, %18 : vector<8x32xf32>
    %46 = math.tanh %45 : vector<8x32xf32>
    %47 = arith.mulf %46, %18 : vector<8x32xf32>
    %48 = arith.addf %47, %21 : vector<8x32xf32>
    %49 = vector.extract_strided_slice %48 {offsets = [0, 0], sizes = [8, 8], strides = [1, 1]} : vector<8x32xf32> to vector<8x8xf32>
    %50 = vector.extract_strided_slice %48 {offsets = [0, 8], sizes = [8, 8], strides = [1, 1]} : vector<8x32xf32> to vector<8x8xf32>
    %51 = vector.extract_strided_slice %48 {offsets = [0, 16], sizes = [8, 8], strides = [1, 1]} : vector<8x32xf32> to vector<8x8xf32>
    %52 = vector.extract_strided_slice %48 {offsets = [0, 24], sizes = [8, 8], strides = [1, 1]} : vector<8x32xf32> to vector<8x8xf32>
    %53 = arith.mulf %50, %38 : vector<8x8xf32>
    %54 = arith.mulf %49, %51 : vector<8x8xf32>
    %55 = arith.addf %53, %54 : vector<8x8xf32>
    %56 = math.tanh %55 : vector<8x8xf32>
    %57 = arith.mulf %52, %56 : vector<8x8xf32>
    %58 = vector.extract_strided_slice %9 {offsets = [16, 0], sizes = [8, 32], strides = [1, 1]} : vector<64x32xf32> to vector<8x32xf32>
    %59 = arith.truncf %57 : vector<8x8xf32> to vector<8x8xbf16>
    %cst_13 = arith.constant dense<0.000000e+00> : vector<8x32xf32>
    %60 = tpu.matmul %59, %2, %cst_13 {dimension_numbers = #tpu.dot_dimension_numbers<[1], [0], [0], [1], [0, 0, 1, 1], [], []>} : vector<8x8xbf16>, vector<8x32xbf16>, vector<8x32xf32> -> vector<8x32xf32>
    %61 = arith.addf %58, %60 : vector<8x32xf32>
    %62 = arith.mulf %61, %18 : vector<8x32xf32>
    %63 = math.tanh %62 : vector<8x32xf32>
    %64 = arith.mulf %63, %18 : vector<8x32xf32>
    %65 = arith.addf %64, %21 : vector<8x32xf32>
    %66 = vector.extract_strided_slice %65 {offsets = [0, 0], sizes = [8, 8], strides = [1, 1]} : vector<8x32xf32> to vector<8x8xf32>
    %67 = vector.extract_strided_slice %65 {offsets = [0, 8], sizes = [8, 8], strides = [1, 1]} : vector<8x32xf32> to vector<8x8xf32>
    %68 = vector.extract_strided_slice %65 {offsets = [0, 16], sizes = [8, 8], strides = [1, 1]} : vector<8x32xf32> to vector<8x8xf32>
    %69 = vector.extract_strided_slice %65 {offsets = [0, 24], sizes = [8, 8], strides = [1, 1]} : vector<8x32xf32> to vector<8x8xf32>
    %70 = arith.mulf %67, %55 : vector<8x8xf32>
    %71 = arith.mulf %66, %68 : vector<8x8xf32>
    %72 = arith.addf %70, %71 : vector<8x8xf32>
    %73 = math.tanh %72 : vector<8x8xf32>
    %74 = arith.mulf %69, %73 : vector<8x8xf32>
    %75 = vector.extract_strided_slice %9 {offsets = [24, 0], sizes = [8, 32], strides = [1, 1]} : vector<64x32xf32> to vector<8x32xf32>
    %76 = arith.truncf %74 : vector<8x8xf32> to vector<8x8xbf16>
    %cst_14 = arith.constant dense<0.000000e+00> : vector<8x32xf32>
    %77 = tpu.matmul %76, %2, %cst_14 {dimension_numbers = #tpu.dot_dimension_numbers<[1], [0], [0], [1], [0, 0, 1, 1], [], []>} : vector<8x8xbf16>, vector<8x32xbf16>, vector<8x32xf32> -> vector<8x32xf32>
    %78 = arith.addf %75, %77 : vector<8x32xf32>
    %79 = arith.mulf %78, %18 : vector<8x32xf32>
    %80 = math.tanh %79 : vector<8x32xf32>
    %81 = arith.mulf %80, %18 : vector<8x32xf32>
    %82 = arith.addf %81, %21 : vector<8x32xf32>
    %83 = vector.extract_strided_slice %82 {offsets = [0, 0], sizes = [8, 8], strides = [1, 1]} : vector<8x32xf32> to vector<8x8xf32>
    %84 = vector.extract_strided_slice %82 {offsets = [0, 8], sizes = [8, 8], strides = [1, 1]} : vector<8x32xf32> to vector<8x8xf32>
    %85 = vector.extract_strided_slice %82 {offsets = [0, 16], sizes = [8, 8], strides = [1, 1]} : vector<8x32xf32> to vector<8x8xf32>
    %86 = vector.extract_strided_slice %82 {offsets = [0, 24], sizes = [8, 8], strides = [1, 1]} : vector<8x32xf32> to vector<8x8xf32>
    %87 = arith.mulf %84, %72 : vector<8x8xf32>
    %88 = arith.mulf %83, %85 : vector<8x8xf32>
    %89 = arith.addf %87, %88 : vector<8x8xf32>
    %90 = math.tanh %89 : vector<8x8xf32>
    %91 = arith.mulf %86, %90 : vector<8x8xf32>
    %92 = vector.extract_strided_slice %9 {offsets = [32, 0], sizes = [8, 32], strides = [1, 1]} : vector<64x32xf32> to vector<8x32xf32>
    %93 = arith.truncf %91 : vector<8x8xf32> to vector<8x8xbf16>
    %cst_15 = arith.constant dense<0.000000e+00> : vector<8x32xf32>
    %94 = tpu.matmul %93, %2, %cst_15 {dimension_numbers = #tpu.dot_dimension_numbers<[1], [0], [0], [1], [0, 0, 1, 1], [], []>} : vector<8x8xbf16>, vector<8x32xbf16>, vector<8x32xf32> -> vector<8x32xf32>
    %95 = arith.addf %92, %94 : vector<8x32xf32>
    %96 = arith.mulf %95, %18 : vector<8x32xf32>
    %97 = math.tanh %96 : vector<8x32xf32>
    %98 = arith.mulf %97, %18 : vector<8x32xf32>
    %99 = arith.addf %98, %21 : vector<8x32xf32>
    %100 = vector.extract_strided_slice %99 {offsets = [0, 0], sizes = [8, 8], strides = [1, 1]} : vector<8x32xf32> to vector<8x8xf32>
    %101 = vector.extract_strided_slice %99 {offsets = [0, 8], sizes = [8, 8], strides = [1, 1]} : vector<8x32xf32> to vector<8x8xf32>
    %102 = vector.extract_strided_slice %99 {offsets = [0, 16], sizes = [8, 8], strides = [1, 1]} : vector<8x32xf32> to vector<8x8xf32>
    %103 = vector.extract_strided_slice %99 {offsets = [0, 24], sizes = [8, 8], strides = [1, 1]} : vector<8x32xf32> to vector<8x8xf32>
    %104 = arith.mulf %101, %89 : vector<8x8xf32>
    %105 = arith.mulf %100, %102 : vector<8x8xf32>
    %106 = arith.addf %104, %105 : vector<8x8xf32>
    %107 = math.tanh %106 : vector<8x8xf32>
    %108 = arith.mulf %103, %107 : vector<8x8xf32>
    %109 = vector.extract_strided_slice %9 {offsets = [40, 0], sizes = [8, 32], strides = [1, 1]} : vector<64x32xf32> to vector<8x32xf32>
    %110 = arith.truncf %108 : vector<8x8xf32> to vector<8x8xbf16>
    %cst_16 = arith.constant dense<0.000000e+00> : vector<8x32xf32>
    %111 = tpu.matmul %110, %2, %cst_16 {dimension_numbers = #tpu.dot_dimension_numbers<[1], [0], [0], [1], [0, 0, 1, 1], [], []>} : vector<8x8xbf16>, vector<8x32xbf16>, vector<8x32xf32> -> vector<8x32xf32>
    %112 = arith.addf %109, %111 : vector<8x32xf32>
    %113 = arith.mulf %112, %18 : vector<8x32xf32>
    %114 = math.tanh %113 : vector<8x32xf32>
    %115 = arith.mulf %114, %18 : vector<8x32xf32>
    %116 = arith.addf %115, %21 : vector<8x32xf32>
    %117 = vector.extract_strided_slice %116 {offsets = [0, 0], sizes = [8, 8], strides = [1, 1]} : vector<8x32xf32> to vector<8x8xf32>
    %118 = vector.extract_strided_slice %116 {offsets = [0, 8], sizes = [8, 8], strides = [1, 1]} : vector<8x32xf32> to vector<8x8xf32>
    %119 = vector.extract_strided_slice %116 {offsets = [0, 16], sizes = [8, 8], strides = [1, 1]} : vector<8x32xf32> to vector<8x8xf32>
    %120 = vector.extract_strided_slice %116 {offsets = [0, 24], sizes = [8, 8], strides = [1, 1]} : vector<8x32xf32> to vector<8x8xf32>
    %121 = arith.mulf %118, %106 : vector<8x8xf32>
    %122 = arith.mulf %117, %119 : vector<8x8xf32>
    %123 = arith.addf %121, %122 : vector<8x8xf32>
    %124 = math.tanh %123 : vector<8x8xf32>
    %125 = arith.mulf %120, %124 : vector<8x8xf32>
    %126 = vector.extract_strided_slice %9 {offsets = [48, 0], sizes = [8, 32], strides = [1, 1]} : vector<64x32xf32> to vector<8x32xf32>
    %127 = arith.truncf %125 : vector<8x8xf32> to vector<8x8xbf16>
    %cst_17 = arith.constant dense<0.000000e+00> : vector<8x32xf32>
    %128 = tpu.matmul %127, %2, %cst_17 {dimension_numbers = #tpu.dot_dimension_numbers<[1], [0], [0], [1], [0, 0, 1, 1], [], []>} : vector<8x8xbf16>, vector<8x32xbf16>, vector<8x32xf32> -> vector<8x32xf32>
    %129 = arith.addf %126, %128 : vector<8x32xf32>
    %130 = arith.mulf %129, %18 : vector<8x32xf32>
    %131 = math.tanh %130 : vector<8x32xf32>
    %132 = arith.mulf %131, %18 : vector<8x32xf32>
    %133 = arith.addf %132, %21 : vector<8x32xf32>
    %134 = vector.extract_strided_slice %133 {offsets = [0, 0], sizes = [8, 8], strides = [1, 1]} : vector<8x32xf32> to vector<8x8xf32>
    %135 = vector.extract_strided_slice %133 {offsets = [0, 8], sizes = [8, 8], strides = [1, 1]} : vector<8x32xf32> to vector<8x8xf32>
    %136 = vector.extract_strided_slice %133 {offsets = [0, 16], sizes = [8, 8], strides = [1, 1]} : vector<8x32xf32> to vector<8x8xf32>
    %137 = vector.extract_strided_slice %133 {offsets = [0, 24], sizes = [8, 8], strides = [1, 1]} : vector<8x32xf32> to vector<8x8xf32>
    %138 = arith.mulf %135, %123 : vector<8x8xf32>
    %139 = arith.mulf %134, %136 : vector<8x8xf32>
    %140 = arith.addf %138, %139 : vector<8x8xf32>
    %141 = math.tanh %140 : vector<8x8xf32>
    %142 = arith.mulf %137, %141 : vector<8x8xf32>
    %143 = vector.extract_strided_slice %9 {offsets = [56, 0], sizes = [8, 32], strides = [1, 1]} : vector<64x32xf32> to vector<8x32xf32>
    %144 = arith.truncf %142 : vector<8x8xf32> to vector<8x8xbf16>
    %cst_18 = arith.constant dense<0.000000e+00> : vector<8x32xf32>
    %145 = tpu.matmul %144, %2, %cst_18 {dimension_numbers = #tpu.dot_dimension_numbers<[1], [0], [0], [1], [0, 0, 1, 1], [], []>} : vector<8x8xbf16>, vector<8x32xbf16>, vector<8x32xf32> -> vector<8x32xf32>
    %146 = arith.addf %143, %145 : vector<8x32xf32>
    %147 = arith.mulf %146, %18 : vector<8x32xf32>
    %148 = math.tanh %147 : vector<8x32xf32>
    %149 = arith.mulf %148, %18 : vector<8x32xf32>
    %150 = arith.addf %149, %21 : vector<8x32xf32>
    %151 = vector.extract_strided_slice %150 {offsets = [0, 0], sizes = [8, 8], strides = [1, 1]} : vector<8x32xf32> to vector<8x8xf32>
    %152 = vector.extract_strided_slice %150 {offsets = [0, 8], sizes = [8, 8], strides = [1, 1]} : vector<8x32xf32> to vector<8x8xf32>
    %153 = vector.extract_strided_slice %150 {offsets = [0, 16], sizes = [8, 8], strides = [1, 1]} : vector<8x32xf32> to vector<8x8xf32>
    %154 = vector.extract_strided_slice %150 {offsets = [0, 24], sizes = [8, 8], strides = [1, 1]} : vector<8x32xf32> to vector<8x8xf32>
    %155 = arith.mulf %152, %140 : vector<8x8xf32>
    %156 = arith.mulf %151, %153 : vector<8x8xf32>
    %157 = arith.addf %155, %156 : vector<8x8xf32>
    %158 = math.tanh %157 : vector<8x8xf32>
    %159 = arith.mulf %154, %158 : vector<8x8xf32>
    %160 = tpu.iota {dimensions = array<i32: 1>} : vector<8x8xi32>
    %c0_19 = arith.constant 0 : index
    %c0_20 = arith.constant 0 : index
    %161 = vector.load %arg2[%c0_19, %c0_20] : memref<8x1xf32, #tpu.memory_space<vmem>>, vector<8x1xf32>
    %162 = vector.shape_cast %161 : vector<8x1xf32> to vector<8x1xf32>
    %163 = vector.broadcast %162 : vector<8x1xf32> to vector<8x8xf32>
    %c0_i32 = arith.constant 0 : i32
    %164 = vector.broadcast %c0_i32 : i32 to vector<8x8xi32>
    %165 = arith.cmpi eq, %160, %164 : vector<8x8xi32>
    %166 = arith.select %165, %163, %159 : vector<8x8xi1>, vector<8x8xf32>
    %c24 = arith.constant 24 : index
    %c0_21 = arith.constant 0 : index
    %167 = vector.load %arg4[%c24, %c0_21] : memref<272x32xf32, #tpu.memory_space<vmem>>, vector<2x32xf32>
    %c32 = arith.constant 32 : index
    %c0_22 = arith.constant 0 : index
    %168 = vector.load %arg4[%c32, %c0_22] : memref<272x32xf32, #tpu.memory_space<vmem>>, vector<8x32xf32>
    %c40 = arith.constant 40 : index
    %c0_23 = arith.constant 0 : index
    %169 = vector.load %arg4[%c40, %c0_23] : memref<272x32xf32, #tpu.memory_space<vmem>>, vector<1x32xf32>
    %c48 = arith.constant 48 : index
    %c0_24 = arith.constant 0 : index
    %170 = vector.load %arg4[%c48, %c0_24] : memref<272x32xf32, #tpu.memory_space<vmem>>, vector<32x32xf32>
    %171 = arith.truncf %170 : vector<32x32xf32> to vector<32x32xbf16>
    %c80 = arith.constant 80 : index
    %c0_25 = arith.constant 0 : index
    %172 = vector.load %arg4[%c80, %c0_25] : memref<272x32xf32, #tpu.memory_space<vmem>>, vector<1x32xf32>
    %c88 = arith.constant 88 : index
    %c0_26 = arith.constant 0 : index
    %173 = vector.load %arg4[%c88, %c0_26] : memref<272x32xf32, #tpu.memory_space<vmem>>, vector<32x8xf32>
    %c120 = arith.constant 120 : index
    %c0_27 = arith.constant 0 : index
    %174 = vector.load %arg4[%c120, %c0_27] : memref<272x32xf32, #tpu.memory_space<vmem>>, vector<1x8xf32>
    %c128 = arith.constant 128 : index
    %c0_28 = arith.constant 0 : index
    %175 = vector.load %arg4[%c128, %c0_28] : memref<272x32xf32, #tpu.memory_space<vmem>>, vector<32x32xf32>
    %176 = arith.truncf %175 : vector<32x32xf32> to vector<32x32xbf16>
    %c160 = arith.constant 160 : index
    %c0_29 = arith.constant 0 : index
    %177 = vector.load %arg4[%c160, %c0_29] : memref<272x32xf32, #tpu.memory_space<vmem>>, vector<1x32xf32>
    %c0_30 = arith.constant 0 : index
    %c0_31 = arith.constant 0 : index
    %178 = vector.load %arg3[%c0_30, %c0_31] : memref<64x2xf32, #tpu.memory_space<vmem>>, vector<64x2xf32>
    %179 = arith.truncf %178 : vector<64x2xf32> to vector<64x2xbf16>
    %180 = arith.truncf %167 : vector<2x32xf32> to vector<2x32xbf16>
    %cst_32 = arith.constant dense<0.000000e+00> : vector<64x32xf32>
    %181 = tpu.matmul %179, %180, %cst_32 {dimension_numbers = #tpu.dot_dimension_numbers<[1], [0], [0], [1], [0, 0, 1, 1], [], []>} : vector<64x2xbf16>, vector<2x32xbf16>, vector<64x32xf32> -> vector<64x32xf32>
    %182 = vector.broadcast %169 : vector<1x32xf32> to vector<64x32xf32>
    %183 = arith.addf %181, %182 : vector<64x32xf32>
    %184 = vector.shape_cast %172 : vector<1x32xf32> to vector<1x32xf32>
    %185 = vector.broadcast %184 : vector<1x32xf32> to vector<8x32xf32>
    %186 = vector.shape_cast %177 : vector<1x32xf32> to vector<1x32xf32>
    %187 = vector.broadcast %186 : vector<1x32xf32> to vector<8x32xf32>
    %188 = arith.truncf %166 : vector<8x8xf32> to vector<8x8xbf16>
    %189 = arith.truncf %168 : vector<8x32xf32> to vector<8x32xbf16>
    %cst_33 = arith.constant dense<0.000000e+00> : vector<8x32xf32>
    %190 = tpu.matmul %188, %189, %cst_33 {dimension_numbers = #tpu.dot_dimension_numbers<[1], [0], [0], [1], [0, 0, 1, 1], [], []>} : vector<8x8xbf16>, vector<8x32xbf16>, vector<8x32xf32> -> vector<8x32xf32>
    %191 = vector.extract_strided_slice %183 {offsets = [0, 0], sizes = [8, 32], strides = [1, 1]} : vector<64x32xf32> to vector<8x32xf32>
    %192 = arith.addf %191, %190 : vector<8x32xf32>
    %cst_34 = arith.constant 0.000000e+00 : f32
    %193 = vector.broadcast %cst_34 : f32 to vector<8x32xf32>
    %194 = arith.maximumf %192, %193 : vector<8x32xf32>
    %195 = arith.truncf %194 : vector<8x32xf32> to vector<8x32xbf16>
    %cst_35 = arith.constant dense<0.000000e+00> : vector<8x32xf32>
    %196 = tpu.matmul %195, %171, %cst_35 {dimension_numbers = #tpu.dot_dimension_numbers<[1], [0], [0], [1], [0, 0, 1, 1], [], []>} : vector<8x32xbf16>, vector<32x32xbf16>, vector<8x32xf32> -> vector<8x32xf32>
    %197 = arith.addf %196, %185 : vector<8x32xf32>
    %cst_36 = arith.constant 0.000000e+00 : f32
    %198 = vector.broadcast %cst_36 : f32 to vector<8x32xf32>
    %199 = arith.maximumf %197, %198 : vector<8x32xf32>
    %200 = arith.truncf %199 : vector<8x32xf32> to vector<8x32xbf16>
    %cst_37 = arith.constant dense<0.000000e+00> : vector<8x32xf32>
    %201 = tpu.matmul %200, %176, %cst_37 {dimension_numbers = #tpu.dot_dimension_numbers<[1], [0], [0], [1], [0, 0, 1, 1], [], []>} : vector<8x32xbf16>, vector<32x32xbf16>, vector<8x32xf32> -> vector<8x32xf32>
    %202 = arith.addf %190, %201 : vector<8x32xf32>
    %203 = arith.addf %202, %187 : vector<8x32xf32>
    %204 = vector.extract_strided_slice %183 {offsets = [8, 0], sizes = [8, 32], strides = [1, 1]} : vector<64x32xf32> to vector<8x32xf32>
    %205 = arith.addf %204, %203 : vector<8x32xf32>
    %cst_38 = arith.constant 0.000000e+00 : f32
    %206 = vector.broadcast %cst_38 : f32 to vector<8x32xf32>
    %207 = arith.maximumf %205, %206 : vector<8x32xf32>
    %208 = arith.truncf %207 : vector<8x32xf32> to vector<8x32xbf16>
    %cst_39 = arith.constant dense<0.000000e+00> : vector<8x32xf32>
    %209 = tpu.matmul %208, %171, %cst_39 {dimension_numbers = #tpu.dot_dimension_numbers<[1], [0], [0], [1], [0, 0, 1, 1], [], []>} : vector<8x32xbf16>, vector<32x32xbf16>, vector<8x32xf32> -> vector<8x32xf32>
    %210 = arith.addf %209, %185 : vector<8x32xf32>
    %cst_40 = arith.constant 0.000000e+00 : f32
    %211 = vector.broadcast %cst_40 : f32 to vector<8x32xf32>
    %212 = arith.maximumf %210, %211 : vector<8x32xf32>
    %213 = arith.truncf %212 : vector<8x32xf32> to vector<8x32xbf16>
    %cst_41 = arith.constant dense<0.000000e+00> : vector<8x32xf32>
    %214 = tpu.matmul %213, %176, %cst_41 {dimension_numbers = #tpu.dot_dimension_numbers<[1], [0], [0], [1], [0, 0, 1, 1], [], []>} : vector<8x32xbf16>, vector<32x32xbf16>, vector<8x32xf32> -> vector<8x32xf32>
    %215 = arith.addf %203, %214 : vector<8x32xf32>
    %216 = arith.addf %215, %187 : vector<8x32xf32>
    %217 = vector.extract_strided_slice %183 {offsets = [16, 0], sizes = [8, 32], strides = [1, 1]} : vector<64x32xf32> to vector<8x32xf32>
    %218 = arith.addf %217, %216 : vector<8x32xf32>
    %cst_42 = arith.constant 0.000000e+00 : f32
    %219 = vector.broadcast %cst_42 : f32 to vector<8x32xf32>
    %220 = arith.maximumf %218, %219 : vector<8x32xf32>
    %221 = arith.truncf %220 : vector<8x32xf32> to vector<8x32xbf16>
    %cst_43 = arith.constant dense<0.000000e+00> : vector<8x32xf32>
    %222 = tpu.matmul %221, %171, %cst_43 {dimension_numbers = #tpu.dot_dimension_numbers<[1], [0], [0], [1], [0, 0, 1, 1], [], []>} : vector<8x32xbf16>, vector<32x32xbf16>, vector<8x32xf32> -> vector<8x32xf32>
    %223 = arith.addf %222, %185 : vector<8x32xf32>
    %cst_44 = arith.constant 0.000000e+00 : f32
    %224 = vector.broadcast %cst_44 : f32 to vector<8x32xf32>
    %225 = arith.maximumf %223, %224 : vector<8x32xf32>
    %226 = arith.truncf %225 : vector<8x32xf32> to vector<8x32xbf16>
    %cst_45 = arith.constant dense<0.000000e+00> : vector<8x32xf32>
    %227 = tpu.matmul %226, %176, %cst_45 {dimension_numbers = #tpu.dot_dimension_numbers<[1], [0], [0], [1], [0, 0, 1, 1], [], []>} : vector<8x32xbf16>, vector<32x32xbf16>, vector<8x32xf32> -> vector<8x32xf32>
    %228 = arith.addf %216, %227 : vector<8x32xf32>
    %229 = arith.addf %228, %187 : vector<8x32xf32>
    %230 = vector.extract_strided_slice %183 {offsets = [24, 0], sizes = [8, 32], strides = [1, 1]} : vector<64x32xf32> to vector<8x32xf32>
    %231 = arith.addf %230, %229 : vector<8x32xf32>
    %cst_46 = arith.constant 0.000000e+00 : f32
    %232 = vector.broadcast %cst_46 : f32 to vector<8x32xf32>
    %233 = arith.maximumf %231, %232 : vector<8x32xf32>
    %234 = arith.truncf %233 : vector<8x32xf32> to vector<8x32xbf16>
    %cst_47 = arith.constant dense<0.000000e+00> : vector<8x32xf32>
    %235 = tpu.matmul %234, %171, %cst_47 {dimension_numbers = #tpu.dot_dimension_numbers<[1], [0], [0], [1], [0, 0, 1, 1], [], []>} : vector<8x32xbf16>, vector<32x32xbf16>, vector<8x32xf32> -> vector<8x32xf32>
    %236 = arith.addf %235, %185 : vector<8x32xf32>
    %cst_48 = arith.constant 0.000000e+00 : f32
    %237 = vector.broadcast %cst_48 : f32 to vector<8x32xf32>
    %238 = arith.maximumf %236, %237 : vector<8x32xf32>
    %239 = arith.truncf %238 : vector<8x32xf32> to vector<8x32xbf16>
    %cst_49 = arith.constant dense<0.000000e+00> : vector<8x32xf32>
    %240 = tpu.matmul %239, %176, %cst_49 {dimension_numbers = #tpu.dot_dimension_numbers<[1], [0], [0], [1], [0, 0, 1, 1], [], []>} : vector<8x32xbf16>, vector<32x32xbf16>, vector<8x32xf32> -> vector<8x32xf32>
    %241 = arith.addf %229, %240 : vector<8x32xf32>
    %242 = arith.addf %241, %187 : vector<8x32xf32>
    %243 = vector.extract_strided_slice %183 {offsets = [32, 0], sizes = [8, 32], strides = [1, 1]} : vector<64x32xf32> to vector<8x32xf32>
    %244 = arith.addf %243, %242 : vector<8x32xf32>
    %cst_50 = arith.constant 0.000000e+00 : f32
    %245 = vector.broadcast %cst_50 : f32 to vector<8x32xf32>
    %246 = arith.maximumf %244, %245 : vector<8x32xf32>
    %247 = arith.truncf %246 : vector<8x32xf32> to vector<8x32xbf16>
    %cst_51 = arith.constant dense<0.000000e+00> : vector<8x32xf32>
    %248 = tpu.matmul %247, %171, %cst_51 {dimension_numbers = #tpu.dot_dimension_numbers<[1], [0], [0], [1], [0, 0, 1, 1], [], []>} : vector<8x32xbf16>, vector<32x32xbf16>, vector<8x32xf32> -> vector<8x32xf32>
    %249 = arith.addf %248, %185 : vector<8x32xf32>
    %cst_52 = arith.constant 0.000000e+00 : f32
    %250 = vector.broadcast %cst_52 : f32 to vector<8x32xf32>
    %251 = arith.maximumf %249, %250 : vector<8x32xf32>
    %252 = arith.truncf %251 : vector<8x32xf32> to vector<8x32xbf16>
    %cst_53 = arith.constant dense<0.000000e+00> : vector<8x32xf32>
    %253 = tpu.matmul %252, %176, %cst_53 {dimension_numbers = #tpu.dot_dimension_numbers<[1], [0], [0], [1], [0, 0, 1, 1], [], []>} : vector<8x32xbf16>, vector<32x32xbf16>, vector<8x32xf32> -> vector<8x32xf32>
    %254 = arith.addf %242, %253 : vector<8x32xf32>
    %255 = arith.addf %254, %187 : vector<8x32xf32>
    %256 = vector.extract_strided_slice %183 {offsets = [40, 0], sizes = [8, 32], strides = [1, 1]} : vector<64x32xf32> to vector<8x32xf32>
    %257 = arith.addf %256, %255 : vector<8x32xf32>
    %cst_54 = arith.constant 0.000000e+00 : f32
    %258 = vector.broadcast %cst_54 : f32 to vector<8x32xf32>
    %259 = arith.maximumf %257, %258 : vector<8x32xf32>
    %260 = arith.truncf %259 : vector<8x32xf32> to vector<8x32xbf16>
    %cst_55 = arith.constant dense<0.000000e+00> : vector<8x32xf32>
    %261 = tpu.matmul %260, %171, %cst_55 {dimension_numbers = #tpu.dot_dimension_numbers<[1], [0], [0], [1], [0, 0, 1, 1], [], []>} : vector<8x32xbf16>, vector<32x32xbf16>, vector<8x32xf32> -> vector<8x32xf32>
    %262 = arith.addf %261, %185 : vector<8x32xf32>
    %cst_56 = arith.constant 0.000000e+00 : f32
    %263 = vector.broadcast %cst_56 : f32 to vector<8x32xf32>
    %264 = arith.maximumf %262, %263 : vector<8x32xf32>
    %265 = arith.truncf %264 : vector<8x32xf32> to vector<8x32xbf16>
    %cst_57 = arith.constant dense<0.000000e+00> : vector<8x32xf32>
    %266 = tpu.matmul %265, %176, %cst_57 {dimension_numbers = #tpu.dot_dimension_numbers<[1], [0], [0], [1], [0, 0, 1, 1], [], []>} : vector<8x32xbf16>, vector<32x32xbf16>, vector<8x32xf32> -> vector<8x32xf32>
    %267 = arith.addf %255, %266 : vector<8x32xf32>
    %268 = arith.addf %267, %187 : vector<8x32xf32>
    %269 = vector.extract_strided_slice %183 {offsets = [48, 0], sizes = [8, 32], strides = [1, 1]} : vector<64x32xf32> to vector<8x32xf32>
    %270 = arith.addf %269, %268 : vector<8x32xf32>
    %cst_58 = arith.constant 0.000000e+00 : f32
    %271 = vector.broadcast %cst_58 : f32 to vector<8x32xf32>
    %272 = arith.maximumf %270, %271 : vector<8x32xf32>
    %273 = arith.truncf %272 : vector<8x32xf32> to vector<8x32xbf16>
    %cst_59 = arith.constant dense<0.000000e+00> : vector<8x32xf32>
    %274 = tpu.matmul %273, %171, %cst_59 {dimension_numbers = #tpu.dot_dimension_numbers<[1], [0], [0], [1], [0, 0, 1, 1], [], []>} : vector<8x32xbf16>, vector<32x32xbf16>, vector<8x32xf32> -> vector<8x32xf32>
    %275 = arith.addf %274, %185 : vector<8x32xf32>
    %cst_60 = arith.constant 0.000000e+00 : f32
    %276 = vector.broadcast %cst_60 : f32 to vector<8x32xf32>
    %277 = arith.maximumf %275, %276 : vector<8x32xf32>
    %278 = arith.truncf %277 : vector<8x32xf32> to vector<8x32xbf16>
    %cst_61 = arith.constant dense<0.000000e+00> : vector<8x32xf32>
    %279 = tpu.matmul %278, %176, %cst_61 {dimension_numbers = #tpu.dot_dimension_numbers<[1], [0], [0], [1], [0, 0, 1, 1], [], []>} : vector<8x32xbf16>, vector<32x32xbf16>, vector<8x32xf32> -> vector<8x32xf32>
    %280 = arith.addf %268, %279 : vector<8x32xf32>
    %281 = arith.addf %280, %187 : vector<8x32xf32>
    %282 = vector.extract_strided_slice %183 {offsets = [56, 0], sizes = [8, 32], strides = [1, 1]} : vector<64x32xf32> to vector<8x32xf32>
    %283 = arith.addf %282, %281 : vector<8x32xf32>
    %cst_62 = arith.constant 0.000000e+00 : f32
    %284 = vector.broadcast %cst_62 : f32 to vector<8x32xf32>
    %285 = arith.maximumf %283, %284 : vector<8x32xf32>
    %286 = arith.truncf %285 : vector<8x32xf32> to vector<8x32xbf16>
    %cst_63 = arith.constant dense<0.000000e+00> : vector<8x32xf32>
    %287 = tpu.matmul %286, %171, %cst_63 {dimension_numbers = #tpu.dot_dimension_numbers<[1], [0], [0], [1], [0, 0, 1, 1], [], []>} : vector<8x32xbf16>, vector<32x32xbf16>, vector<8x32xf32> -> vector<8x32xf32>
    %288 = arith.addf %287, %185 : vector<8x32xf32>
    %cst_64 = arith.constant 0.000000e+00 : f32
    %289 = vector.broadcast %cst_64 : f32 to vector<8x32xf32>
    %290 = arith.maximumf %288, %289 : vector<8x32xf32>
    %291 = tpu.concatenate %199, %212, %225, %238, %251, %264, %277, %290 in 0 : vector<8x32xf32>, vector<8x32xf32>, vector<8x32xf32>, vector<8x32xf32>, vector<8x32xf32>, vector<8x32xf32>, vector<8x32xf32>, vector<8x32xf32> -> vector<64x32xf32>
    %292 = arith.truncf %291 : vector<64x32xf32> to vector<64x32xbf16>
    %293 = arith.truncf %173 : vector<32x8xf32> to vector<32x8xbf16>
    %cst_65 = arith.constant dense<0.000000e+00> : vector<64x8xf32>
    %294 = tpu.matmul %292, %293, %cst_65 {dimension_numbers = #tpu.dot_dimension_numbers<[1], [0], [0], [1], [0, 0, 1, 1], [], []>} : vector<64x32xbf16>, vector<32x8xbf16>, vector<64x8xf32> -> vector<64x8xf32>
    %295 = vector.broadcast %174 : vector<1x8xf32> to vector<64x8xf32>
    %296 = arith.addf %294, %295 : vector<64x8xf32>
    %297 = vector.extract_strided_slice %296 {offsets = [0, 0], sizes = [8, 8], strides = [1, 1]} : vector<64x8xf32> to vector<8x8xf32>
    %298 = arith.addf %166, %297 : vector<8x8xf32>
    %299 = vector.extract_strided_slice %296 {offsets = [8, 0], sizes = [8, 8], strides = [1, 1]} : vector<64x8xf32> to vector<8x8xf32>
    %300 = arith.addf %298, %299 : vector<8x8xf32>
    %301 = vector.extract_strided_slice %296 {offsets = [16, 0], sizes = [8, 8], strides = [1, 1]} : vector<64x8xf32> to vector<8x8xf32>
    %302 = arith.addf %300, %301 : vector<8x8xf32>
    %303 = vector.extract_strided_slice %296 {offsets = [24, 0], sizes = [8, 8], strides = [1, 1]} : vector<64x8xf32> to vector<8x8xf32>
    %304 = arith.addf %302, %303 : vector<8x8xf32>
    %305 = vector.extract_strided_slice %296 {offsets = [32, 0], sizes = [8, 8], strides = [1, 1]} : vector<64x8xf32> to vector<8x8xf32>
    %306 = arith.addf %304, %305 : vector<8x8xf32>
    %307 = vector.extract_strided_slice %296 {offsets = [40, 0], sizes = [8, 8], strides = [1, 1]} : vector<64x8xf32> to vector<8x8xf32>
    %308 = arith.addf %306, %307 : vector<8x8xf32>
    %309 = vector.extract_strided_slice %296 {offsets = [48, 0], sizes = [8, 8], strides = [1, 1]} : vector<64x8xf32> to vector<8x8xf32>
    %310 = arith.addf %308, %309 : vector<8x8xf32>
    %311 = vector.extract_strided_slice %296 {offsets = [56, 0], sizes = [8, 8], strides = [1, 1]} : vector<64x8xf32> to vector<8x8xf32>
    %312 = arith.addf %310, %311 : vector<8x8xf32>
    %313 = tpu.concatenate %298, %300, %302, %304, %306, %308, %310, %312 in 0 : vector<8x8xf32>, vector<8x8xf32>, vector<8x8xf32>, vector<8x8xf32>, vector<8x8xf32>, vector<8x8xf32>, vector<8x8xf32>, vector<8x8xf32> -> vector<64x8xf32>
    %c168 = arith.constant 168 : index
    %c0_66 = arith.constant 0 : index
    %314 = vector.load %arg4[%c168, %c0_66] : memref<272x32xf32, #tpu.memory_space<vmem>>, vector<8x32xf32>
    %c176 = arith.constant 176 : index
    %c0_67 = arith.constant 0 : index
    %315 = vector.load %arg4[%c176, %c0_67] : memref<272x32xf32, #tpu.memory_space<vmem>>, vector<2x32xf32>
    %c184 = arith.constant 184 : index
    %c0_68 = arith.constant 0 : index
    %316 = vector.load %arg4[%c184, %c0_68] : memref<272x32xf32, #tpu.memory_space<vmem>>, vector<1x32xf32>
    %c192 = arith.constant 192 : index
    %c0_69 = arith.constant 0 : index
    %317 = vector.load %arg4[%c192, %c0_69] : memref<272x32xf32, #tpu.memory_space<vmem>>, vector<32x32xf32>
    %c224 = arith.constant 224 : index
    %c0_70 = arith.constant 0 : index
    %318 = vector.load %arg4[%c224, %c0_70] : memref<272x32xf32, #tpu.memory_space<vmem>>, vector<1x32xf32>
    %c232 = arith.constant 232 : index
    %c0_71 = arith.constant 0 : index
    %319 = vector.load %arg4[%c232, %c0_71] : memref<272x32xf32, #tpu.memory_space<vmem>>, vector<32x1xf32>
    %c264 = arith.constant 264 : index
    %c0_72 = arith.constant 0 : index
    %320 = vector.load %arg4[%c264, %c0_72] : memref<272x32xf32, #tpu.memory_space<vmem>>, vector<1x1xf32>
    %321 = arith.truncf %313 : vector<64x8xf32> to vector<64x8xbf16>
    %322 = arith.truncf %314 : vector<8x32xf32> to vector<8x32xbf16>
    %cst_73 = arith.constant dense<0.000000e+00> : vector<64x32xf32>
    %323 = tpu.matmul %321, %322, %cst_73 {dimension_numbers = #tpu.dot_dimension_numbers<[1], [0], [0], [1], [0, 0, 1, 1], [], []>} : vector<64x8xbf16>, vector<8x32xbf16>, vector<64x32xf32> -> vector<64x32xf32>
    %324 = arith.truncf %178 : vector<64x2xf32> to vector<64x2xbf16>
    %325 = arith.truncf %315 : vector<2x32xf32> to vector<2x32xbf16>
    %cst_74 = arith.constant dense<0.000000e+00> : vector<64x32xf32>
    %326 = tpu.matmul %324, %325, %cst_74 {dimension_numbers = #tpu.dot_dimension_numbers<[1], [0], [0], [1], [0, 0, 1, 1], [], []>} : vector<64x2xbf16>, vector<2x32xbf16>, vector<64x32xf32> -> vector<64x32xf32>
    %327 = arith.addf %323, %326 : vector<64x32xf32>
    %328 = vector.broadcast %316 : vector<1x32xf32> to vector<64x32xf32>
    %329 = arith.addf %327, %328 : vector<64x32xf32>
    %cst_75 = arith.constant 0.000000e+00 : f32
    %330 = vector.broadcast %cst_75 : f32 to vector<64x32xf32>
    %331 = arith.maximumf %329, %330 : vector<64x32xf32>
    %332 = arith.truncf %331 : vector<64x32xf32> to vector<64x32xbf16>
    %333 = arith.truncf %317 : vector<32x32xf32> to vector<32x32xbf16>
    %cst_76 = arith.constant dense<0.000000e+00> : vector<64x32xf32>
    %334 = tpu.matmul %332, %333, %cst_76 {dimension_numbers = #tpu.dot_dimension_numbers<[1], [0], [0], [1], [0, 0, 1, 1], [], []>} : vector<64x32xbf16>, vector<32x32xbf16>, vector<64x32xf32> -> vector<64x32xf32>
    %335 = vector.broadcast %318 : vector<1x32xf32> to vector<64x32xf32>
    %336 = arith.addf %334, %335 : vector<64x32xf32>
    %cst_77 = arith.constant 0.000000e+00 : f32
    %337 = vector.broadcast %cst_77 : f32 to vector<64x32xf32>
    %338 = arith.maximumf %336, %337 : vector<64x32xf32>
    %339 = arith.truncf %338 : vector<64x32xf32> to vector<64x32xbf16>
    %340 = arith.truncf %319 : vector<32x1xf32> to vector<32x1xbf16>
    %cst_78 = arith.constant dense<0.000000e+00> : vector<64x1xf32>
    %341 = tpu.matmul %339, %340, %cst_78 {dimension_numbers = #tpu.dot_dimension_numbers<[1], [0], [0], [1], [0, 0, 1, 1], [], []>} : vector<64x32xbf16>, vector<32x1xbf16>, vector<64x1xf32> -> vector<64x1xf32>
    %342 = vector.broadcast %320 : vector<1x1xf32> to vector<64x1xf32>
    %343 = arith.addf %341, %342 : vector<64x1xf32>
    %c0_79 = arith.constant 0 : index
    %c0_80 = arith.constant 0 : index
    %344 = vector.load %arg5[%c0_79, %c0_80] : memref<64x1xf32, #tpu.memory_space<vmem>>, vector<64x1xf32>
    tpu.vector_store %arg5[%c0_79, %c0_80], %343 {strides = array<i32>} : memref<64x1xf32, #tpu.memory_space<vmem>>, vector<64x1xf32>,
    return
  }
  func.func @transform_0(%arg0: i32) -> (i32, i32) {
    %c0_i32 = arith.constant 0 : i32
    %c0_i32_0 = arith.constant 0 : i32
    %c0_i32_1 = arith.constant 0 : i32
    return %c0_i32, %c0_i32_0 : i32, i32
  }
  func.func @transform_1(%arg0: i32) -> (i32, i32) {
    %c0_i32 = arith.constant 0 : i32
    %c0_i32_0 = arith.constant 0 : i32
    %c0_i32_1 = arith.constant 0 : i32
    return %c0_i32, %c0_i32_0 : i32, i32
  }
  func.func @transform_2(%arg0: i32) -> (i32, i32) {
    %c0_i32 = arith.constant 0 : i32
    %c0_i32_0 = arith.constant 0 : i32
    %c0_i32_1 = arith.constant 0 : i32
    return %c0_i32, %c0_i32_0 : i32, i32
  }
  func.func @transform_3(%arg0: i32) -> (i32, i32) {
    %c0_i32 = arith.constant 0 : i32
    %c0_i32_0 = arith.constant 0 : i32
    %c0_i32_1 = arith.constant 0 : i32
    return %c0_i32, %c0_i32_0 : i32, i32
  }
  func.func @transform_4(%arg0: i32) -> (i32, i32) {
    %c0_i32 = arith.constant 0 : i32
    %c0_i32_0 = arith.constant 0 : i32
    %c0_i32_1 = arith.constant 0 : i32
    return %c0_i32, %c0_i32_0 : i32, i32
  }
}

</mosaic_0001>

<bundles_post_ra>
// kernel: bbnode_lstm_forward.1
= control target key start
LH: loop header
LB: loop body
LE: loop exit
PB: predicated region body
PF: predicated region fallthrough
CT: control target
= control target key end

     0   :  { %vm52_vm0 = vcmask 1040384   ;;  %vm53_vm1 = vcmask 1041408   ;;  %v2506_v1 = vmov 65535   ;;  %vm39_vm2 = vcmask 23552   ;;  %s2511_s10 = smov 112   ;;  %s2512_s11 = smov 8   ;;  %s3096_s3 = inlined_call_operand.vmem [shape: f32[272,32], index: 3, kind: input, shape index: {}]   ;;  %s3097_s0 = inlined_call_operand.vmem [shape: f32[64,3], index: 0, kind: input, shape index: {}]   ;;  %s3098_s1 = inlined_call_operand.vmem [shape: f32[8,1], index: 1, kind: input, shape index: {}]   ;;  %s3099_s2 = inlined_call_operand.vmem [shape: f32[64,2], index: 2, kind: input, shape index: {}]   ;;  %s3100_s4 = inlined_call_operand.vmem [shape: f32[64,1], index: 4, kind: output, shape index: {}]  }
   0x1   :  { %v18_v0 = vld [vmem:[%s3096_s3] sm:$0x7]  ;;  %v54_v2 = vsel %vm52_vm0, 4294967295, %v2506_v1  ;;  %v23_v4 = vld [vmem:[%s3097_s0 + $0x8] sm:$0xff]  ;;  %v24_v10 = vld [vmem:[%s3097_s0 + $0x10] sm:$0xff]  ;;  %v2507_v17 = vmov 0   ;;  %v124_v23 = vlaneseq }
   0x2   :  { %v22_v3 = vld [vmem:[%s3097_s0] sm:$0xff]  ;;  %v34_v5 = vpack.c.bf16 %v18_v0, %v18_v0  ;;  %v55_v6 = vsel %vm53_vm1, %v54_v2, 0  ;;  %v27_v9 = vld [vmem:[%s3097_s0 + $0x28] sm:$0xff]  ;;  %v25_v12 = vld [vmem:[%s3097_s0 + $0x18] sm:$0xff]  ;;  %2472 = vset.pattern.permute.xlu1 %v2507_v17  ;;  %vm135_vm3 = vcmask 1043456   ;;  %2473 = vset.pattern.permute.xlu0 %v2507_v17  ;;  %v2508_v21 = vmov 0.0  }
   0x3   :  { %v30_v7 = vpack.c.bf16 %v23_v4, %v22_v3  ;;  %v26_v8 = vld [vmem:[%s3097_s0 + $0x20] sm:$0xff]  ;;  %v28_v13 = vld [vmem:[%s3097_s0 + $0x30] sm:$0xff]  ;;  %v29_v14 = vld [vmem:[%s3097_s0 + $0x38] sm:$0xff]  ;;  %v31_v19 = vpack.c.bf16 %v25_v12, %v24_v10  ;;  %vm2509_vm4 = vmmov 0   ;;  %v2595_v25 = vand.u32 127, %v124_v23  ;;  %s2513_s12 = smov 16  }
   0x4   :  { %v32_v11 = vpack.c.bf16 %v27_v9, %v26_v8  ;;  %v57_v15 = vand.u32 %v55_v6, %v34_v5  ;;  %v19_v16 = vld [vmem:[%s3096_s3 + $0x8] sm:$0xff]  ;;  %v33_v20 = vpack.c.bf16 %v29_v14, %v28_v13  ;;  %v2048_v24 = vld [vmem:[%s3096_s3 + $0x10] ss:$0 sm:$0xff]  ;;  %v2510_v40 = vmov 0.5   ;;  %s2514_s13 = smov 104  }
   0x5   :  { %2210 = vmatprep.mubr.msk.bf16.mxu0 %vm39_vm2, %v30_v7  ;;  %v20_v18 = vpack.c.bf16 %v19_v16, %v19_v16  ;;  %vm126_vm5 = vcmp.ge.s32.totalorder %v2595_v25, 16  ;;  %vm127_vm6 = vcmp.lt.s32.totalorder %v2595_v25, 24  ;;  %vm131_vm8 = vcmask 64512  }
   0x6   :  { %2214 = vmatprep.mubr.msk.bf16.mxu1 %vm39_vm2, %v32_v11  ;;  %2208 = vmatprep.subr.bf16.mxu0 %v57_v15  ;;  %vm128_vm7 = vmand %vm126_vm5, %vm127_vm6  ;;  %vm735_vm9 = vcmask 15360   ;;  %vm690_vm10 = vcmp.eq.s32.totalorder %v2595_v25, 0  ;;  %vm875_vm11 = vcmask 261120   ;;  %vm2035_vm12 = vcmask 7168  }
   0x7   :  { %2458 = vmatprep.subr.bf16.mxu1 %v57_v15  ;;  %2209 = vmatpush3.bf16.msra.mxu0 %v57_v15  ;;  %v2575_v22 = vsel %vm135_vm3, %v20_v18, 0  ;;  %v2611_v41 = vsel %vm128_vm7, 1.0, %v2510_v40  ;;  %v2614_v49 = vsel %vm128_vm7, 0.0, %v2510_v40 }
   0x8   :  { %2459 = vmatpush3.bf16.msra.mxu1 %v57_v15  ;;  %2230 = vmatprep.subr.bf16.mxu0 %v2508_v21 }
   0x9   :  { %2218 = vmatprep.subr.bf16.mxu1 %v2508_v21 }
   0xa   :  { %2211 = vmatmul.mubr.msk.bf16.vlgmr.msra.gmra.mxu0 %vm39_vm2, %v31_v19 }
   0xb   :  { %2215 = vmatmul.mubr.msk.bf16.vlgmr.msra.gmra.mxu1 %vm39_vm2, %v33_v20  ;;  %2231 = vmatpush3.bf16.msra.mxu0 %v2575_v22 }
   0xc   :  { %2219 = vmatpush3.bf16.msra.mxu1 %v2575_v22  ;;  %2220 = vmatprep.mubr.msk.bf16.mxu1 %vm2509_vm4, %v2508_v21 }
   0xd   :  { %2224 = vmatprep.subr.bf16.mxu1 %v2508_v21  ;;  %2232 = vmatprep.mubr.msk.bf16.mxu0 %vm2509_vm4, %v2508_v21 }
   0xe   :  { %2242 = vmatprep.subr.bf16.mxu0 %v2508_v21 }
  0x13   :  { %2221 = vmatmul.mubr.bf16.vlgmr.msra.gmra.mxu1 %v2507_v17 }
  0x14   :  { %2225 = vmatpush3.bf16.msra.mxu1 %v2575_v22  ;;  %2226 = vmatprep.mubr.msk.bf16.mxu1 %vm2509_vm4, %v2508_v21 }
  0x15   :  { %2236 = vmatprep.subr.bf16.mxu1 %v2508_v21 }
  0xca   :  { %v2212_v26 = vpop.f32.mrf.mxu0 }
  0xcb   :  { %v2216_v27 = vpop.f32.mrf.mxu1  ;;  %v2597_v28 = vadd.f32 %v2212_v26, %v2048_v24 }
  0xcc   :  { %v2599_v29 = vadd.f32 %v2216_v27, %v2048_v24  ;;  %v93_v30 = vpop.f32.mrf.mxu0 }
  0xcd   :  { %v109_v31 = vpop.f32.mrf.mxu1  ;;  %v94_v38 = vadd.f32 %v2048_v24, %v93_v30 }
  0xce   :  { %v2603_v32 = vadd.f32 %v2048_v24, %v109_v31  ;;  %v2213_v33 = vpop.f32.mrf.mxu0 }
  0xcf   :  { %v2217_v34 = vpop.f32.mrf.mxu1  ;;  %v2605_v35 = vadd.f32 %v2213_v33, %v2048_v24 }
  0xd0   :  { %v2607_v36 = vadd.f32 %v2217_v34, %v2048_v24  ;;  %v96_v62 = vpop.f32.mrf.mxu0 }
  0xd1   :  { %v112_v37 = vpop.f32.mrf.mxu1  ;;  %v97_v63 = vadd.f32 %v2048_v24, %v96_v62 }
  0xd2   :  { %v2609_v39 = vadd.f32 %v2048_v24, %v112_v37 }
  0xd3   :  { %v173_v42 = vpop.f32.mrf.mxu1 }
  0xd4   :  { %v179_v43 = vadd.f32 %v173_v42, %v94_v38 }
  0xd5   :  { %v2222_v44 = vpop.f32.mrf.mxu1 }
  0xd6   :  { %v180_v45 = vmul.f32 %v179_v43, %v2611_v41 }
  0xd7   :  { %v176_v46 = vpop.f32.mrf.mxu1 }
  0xd8   :  { %2474 = vtanh.f32 %v180_v45 }
  0xd9   :  { %v2223_v47 = vpop.f32.mrf.mxu1 }
  0xe5   :  { %v2475_v48 = vpop.eup %2474 }
  0xe6   :  { %v182_v50 = vmul.f32 %v2475_v48, %v2611_v41 }
  0xe8   :  { %v183_v51 = vadd.f32 %v182_v50, %v2614_v49 }
  0xea   :  { %186 = vrot.lane.b32.xlu0 %v183_v51, %s2511_s10  ;;  %v184_v54 = vmul.f32 0.0, %v183_v51 }
 0x15c   :  { %v187_v52 = vpop.permute.xlu0 %186 }
 0x15d   :  { %v189_v53 = vmul.f32 %v187_v52, %v183_v51 }
 0x15f   :  { %191 = vrot.lane.b32.xlu0 %v189_v53, %s2512_s11 }
 0x1d1   :  { %v192_v55 = vpop.permute.xlu0 %191 }
 0x1d2   :  { %v194_v56 = vadd.f32 %v192_v55, %v184_v54 }
 0x1d4   :  { %2476 = vtanh.f32 %v194_v56 }
 0x1e1   :  { %v2477_v57 = vpop.eup %2476 }
 0x1e2   :  { %197 = vrot.lane.b32.xlu1 %v2477_v57, %s2513_s12 }
 0x254   :  { %v198_v58 = vpop.permute.xlu1 %197 }
 0x255   :  { %v200_v59 = vmul.f32 %v198_v58, %v183_v51 }
 0x257   :  { %v201_v60 = vpack.c.bf16 %v200_v59, %v200_v59 }
 0x259   :  { %203 = vrot.lane.b32.xlu1 %v201_v60, %s2514_s13 }
 0x2cb   :  { %v204_v61 = vpop.permute.xlu1 %203 }
 0x2cc   :  { %2227 = vmatmul.mubr.msk.bf16.vlgmr.msra.gmra.mxu1 %vm131_vm8, %v204_v61 }
 0x2cd   :  { %2237 = vmatpush3.bf16.msra.mxu1 %v2575_v22  ;;  %2238 = vmatprep.mubr.msk.bf16.mxu1 %vm2509_vm4, %v2508_v21 }
 0x2ce   :  { %2248 = vmatprep.subr.bf16.mxu1 %v2508_v21 }
 0x38c   :  { %v242_v0 = vpop.f32.mrf.mxu1 }
 0x38d   :  { %v248_v1 = vadd.f32 %v242_v0, %v97_v63 }
 0x38e   :  { %v2228_v2 = vpop.f32.mrf.mxu1 }
 0x38f   :  { %v249_v3 = vmul.f32 %v248_v1, %v2611_v41 }
 0x390   :  { %v245_v4 = vpop.f32.mrf.mxu1 }
 0x391   :  { %2478 = vtanh.f32 %v249_v3 }
 0x392   :  { %v2229_v5 = vpop.f32.mrf.mxu1 }
 0x39e   :  { %v2479_v6 = vpop.eup %2478 }
 0x39f   :  { %v251_v7 = vmul.f32 %v2479_v6, %v2611_v41 }
 0x3a1   :  { %v252_v8 = vadd.f32 %v251_v7, %v2614_v49 }
 0x3a3   :  { %255 = vrot.lane.b32.xlu0 %v252_v8, %s2511_s10  ;;  %v253_v11 = vmul.f32 %v252_v8, %v194_v56 }
 0x415   :  { %v256_v9 = vpop.permute.xlu0 %255 }
 0x416   :  { %v258_v10 = vmul.f32 %v256_v9, %v252_v8 }
 0x418   :  { %260 = vrot.lane.b32.xlu1 %v258_v10, %s2512_s11 }
 0x48a   :  { %v261_v12 = vpop.permute.xlu1 %260 }
 0x48b   :  { %v263_v13 = vadd.f32 %v261_v12, %v253_v11 }
 0x48d   :  { %2480 = vtanh.f32 %v263_v13 }
 0x49a   :  { %v2481_v14 = vpop.eup %2480 }
 0x49b   :  { %266 = vrot.lane.b32.xlu0 %v2481_v14, %s2513_s12 }
 0x50d   :  { %v267_v15 = vpop.permute.xlu0 %266 }
 0x50e   :  { %v269_v16 = vmul.f32 %v267_v15, %v252_v8 }
 0x510   :  { %v270_v17 = vpack.c.bf16 %v269_v16, %v269_v16 }
 0x512   :  { %272 = vrot.lane.b32.xlu1 %v270_v17, %s2514_s13 }
 0x584   :  { %v273_v18 = vpop.permute.xlu1 %272 }
 0x585   :  { %2233 = vmatmul.mubr.msk.bf16.vlgmr.msra.gmra.mxu0 %vm131_vm8, %v273_v18 }
 0x586   :  { %2243 = vmatpush3.bf16.msra.mxu0 %v2575_v22  ;;  %2244 = vmatprep.mubr.msk.bf16.mxu0 %vm2509_vm4, %v2508_v21 }
 0x587   :  { %2254 = vmatprep.subr.bf16.mxu0 %v2508_v21 }
 0x645   :  { %v311_v19 = vpop.f32.mrf.mxu0 }
 0x646   :  { %v317_v20 = vadd.f32 %v311_v19, %v2597_v28 }
 0x647   :  { %v2234_v23 = vpop.f32.mrf.mxu0 }
 0x648   :  { %v318_v24 = vmul.f32 %v317_v20, %v2611_v41 }
 0x649   :  { %v314_v26 = vpop.f32.mrf.mxu0 }
 0x64a   :  { %2482 = vtanh.f32 %v318_v24 }
 0x64b   :  { %v2235_v27 = vpop.f32.mrf.mxu0 }
 0x657   :  { %v2483_v30 = vpop.eup %2482 }
 0x658   :  { %v320_v31 = vmul.f32 %v2483_v30, %v2611_v41 }
 0x65a   :  { %v321_v33 = vadd.f32 %v320_v31, %v2614_v49 }
 0x65c   :  { %324 = vrot.lane.b32.xlu0 %v321_v33, %s2511_s10  ;;  %v322_v38 = vmul.f32 %v321_v33, %v263_v13 }
 0x6ce   :  { %v325_v34 = vpop.permute.xlu0 %324 }
 0x6cf   :  { %v327_v37 = vmul.f32 %v325_v34, %v321_v33 }
 0x6d1   :  { %329 = vrot.lane.b32.xlu1 %v327_v37, %s2512_s11 }
 0x743   :  { %v330_v40 = vpop.permute.xlu1 %329 }
 0x744   :  { %v332_v28 = vadd.f32 %v330_v40, %v322_v38 }
 0x746   :  { %2484 = vtanh.f32 %v332_v28 }
 0x753   :  { %v2485_v42 = vpop.eup %2484 }
 0x754   :  { %335 = vrot.lane.b32.xlu0 %v2485_v42, %s2513_s12 }
 0x7c6   :  { %v336_v43 = vpop.permute.xlu0 %335 }
 0x7c7   :  { %v338_v44 = vmul.f32 %v336_v43, %v321_v33 }
 0x7c9   :  { %v339_v45 = vpack.c.bf16 %v338_v44, %v338_v44 }
 0x7cb   :  { %341 = vrot.lane.b32.xlu1 %v339_v45, %s2514_s13 }
 0x83d   :  { %v342_v46 = vpop.permute.xlu1 %341 }
 0x83e   :  { %2239 = vmatmul.mubr.msk.bf16.vlgmr.msra.gmra.mxu1 %vm131_vm8, %v342_v46 }
 0x83f   :  { %2249 = vmatpush3.bf16.msra.mxu1 %v2575_v22  ;;  %2250 = vmatprep.mubr.msk.bf16.mxu1 %vm2509_vm4, %v2508_v21 }
 0x840   :  { %2260 = vmatprep.subr.bf16.mxu1 %v2508_v21 }
 0x8fe   :  { %v380_v47 = vpop.f32.mrf.mxu1 }
 0x8ff   :  { %v386_v48 = vadd.f32 %v380_v47, %v2605_v35 }
 0x900   :  { %v2240_v50 = vpop.f32.mrf.mxu1 }
 0x901   :  { %v387_v51 = vmul.f32 %v386_v48, %v2611_v41 }
 0x902   :  { %v383_v52 = vpop.f32.mrf.mxu1 }
 0x903   :  { %2486 = vtanh.f32 %v387_v51 }
 0x904   :  { %v2241_v53 = vpop.f32.mrf.mxu1 }
 0x910   :  { %v2487_v54 = vpop.eup %2486 }
 0x911   :  { %v389_v55 = vmul.f32 %v2487_v54, %v2611_v41 }
 0x913   :  { %v390_v56 = vadd.f32 %v389_v55, %v2614_v49 }
 0x915   :  { %393 = vrot.lane.b32.xlu0 %v390_v56, %s2511_s10  ;;  %v391_v59 = vmul.f32 %v390_v56, %v332_v28 }
 0x987   :  { %v394_v57 = vpop.permute.xlu0 %393 }
 0x988   :  { %v396_v58 = vmul.f32 %v394_v57, %v390_v56 }
 0x98a   :  { %398 = vrot.lane.b32.xlu1 %v396_v58, %s2512_s11 }
 0x9fc   :  { %v399_v60 = vpop.permute.xlu1 %398 }
 0x9fd   :  { %v401_v35 = vadd.f32 %v399_v60, %v391_v59 }
 0x9ff   :  { %2488 = vtanh.f32 %v401_v35 }
 0xa0c   :  { %v2489_v61 = vpop.eup %2488 }
 0xa0d   :  { %404 = vrot.lane.b32.xlu0 %v2489_v61, %s2513_s12 }
 0xa7f   :  { %v405_v62 = vpop.permute.xlu0 %404 }
 0xa80   :  { %v407_v63 = vmul.f32 %v405_v62, %v390_v56 }
 0xa82   :  { %v408_v0 = vpack.c.bf16 %v407_v63, %v407_v63 }
 0xa84   :  { %410 = vrot.lane.b32.xlu1 %v408_v0, %s2514_s13 }
 0xaf6   :  { %v411_v1 = vpop.permute.xlu1 %410 }
 0xaf7   :  { %2245 = vmatmul.mubr.msk.bf16.vlgmr.msra.gmra.mxu0 %vm131_vm8, %v411_v1 }
 0xaf8   :  { %2255 = vmatpush3.bf16.msra.mxu0 %v2575_v22  ;;  %2256 = vmatprep.mubr.msk.bf16.mxu0 %vm2509_vm4, %v2508_v21 }
 0xbb7   :  { %v449_v2 = vpop.f32.mrf.mxu0 }
 0xbb8   :  { %v455_v3 = vadd.f32 %v449_v2, %v2603_v32 }
 0xbb9   :  { %v2246_v4 = vpop.f32.mrf.mxu0 }
 0xbba   :  { %v456_v5 = vmul.f32 %v455_v3, %v2611_v41 }
 0xbbb   :  { %v452_v6 = vpop.f32.mrf.mxu0 }
 0xbbc   :  { %2490 = vtanh.f32 %v456_v5 }
 0xbbd   :  { %v2247_v7 = vpop.f32.mrf.mxu0 }
 0xbc9   :  { %v2491_v8 = vpop.eup %2490 }
 0xbca   :  { %v458_v9 = vmul.f32 %v2491_v8, %v2611_v41 }
 0xbcc   :  { %v459_v10 = vadd.f32 %v458_v9, %v2614_v49 }
 0xbce   :  { %462 = vrot.lane.b32.xlu0 %v459_v10, %s2511_s10  ;;  %v460_v13 = vmul.f32 %v459_v10, %v401_v35 }
 0xc40   :  { %v463_v11 = vpop.permute.xlu0 %462 }
 0xc41   :  { %v465_v12 = vmul.f32 %v463_v11, %v459_v10 }
 0xc43   :  { %467 = vrot.lane.b32.xlu1 %v465_v12, %s2512_s11 }
 0xcb5   :  { %v468_v14 = vpop.permute.xlu1 %467 }
 0xcb6   :  { %v470_v32 = vadd.f32 %v468_v14, %v460_v13 }
 0xcb8   :  { %2492 = vtanh.f32 %v470_v32 }
 0xcc5   :  { %v2493_v15 = vpop.eup %2492 }
 0xcc6   :  { %473 = vrot.lane.b32.xlu0 %v2493_v15, %s2513_s12  ;;  %v719_v15 = vld [vmem:[%s3099_s2 + $0x8] sm:$0xff] }
 0xd38   :  { %v474_v16 = vpop.permute.xlu0 %473 }
 0xd39   :  { %v476_v17 = vmul.f32 %v474_v16, %v459_v10  ;;  %v720_v16 = vld [vmem:[%s3099_s2 + $0x10] sm:$0xff] }
 0xd3b   :  { %v477_v18 = vpack.c.bf16 %v476_v17, %v476_v17 }
 0xd3d   :  { %479 = vrot.lane.b32.xlu1 %v477_v18, %s2514_s13 }
 0xdaf   :  { %v480_v19 = vpop.permute.xlu1 %479 }
 0xdb0   :  { %2251 = vmatmul.mubr.msk.bf16.vlgmr.msra.gmra.mxu1 %vm131_vm8, %v480_v19  ;;  %v721_v19 = vld [vmem:[%s3099_s2 + $0x18] sm:$0xff] }
 0xdb1   :  { %2261 = vmatpush3.bf16.msra.mxu1 %v2575_v22  ;;  %2262 = vmatprep.mubr.msk.bf16.mxu1 %vm2509_vm4, %v2508_v21 }
 0xdb2   :  { %2276 = vmatprep.subr.bf16.mxu1 %v2508_v21 }
 0xe70   :  { %v518_v20 = vpop.f32.mrf.mxu1 }
 0xe71   :  { %v524_v23 = vadd.f32 %v518_v20, %v2609_v39 }
 0xe72   :  { %v2252_v24 = vpop.f32.mrf.mxu1 }
 0xe73   :  { %v525_v26 = vmul.f32 %v524_v23, %v2611_v41  ;;  %v2728_v23 = vpack.c.bf16 %v721_v19, %v720_v16 }
 0xe74   :  { %v521_v27 = vpop.f32.mrf.mxu1 }
 0xe75   :  { %2494 = vtanh.f32 %v525_v26 }
 0xe76   :  { %v2253_v30 = vpop.f32.mrf.mxu1 }
 0xe82   :  { %v2495_v31 = vpop.eup %2494 }
 0xe83   :  { %v527_v33 = vmul.f32 %v2495_v31, %v2611_v41 }
 0xe85   :  { %v528_v34 = vadd.f32 %v527_v33, %v2614_v49 }
 0xe87   :  { %531 = vrot.lane.b32.xlu0 %v528_v34, %s2511_s10  ;;  %v529_v38 = vmul.f32 %v528_v34, %v470_v32  ;;  %v718_v32 = vld [vmem:[%s3099_s2] sm:$0xff] }
 0xe88   :  { %v2721_v18 = vpack.c.bf16 %v719_v15, %v718_v32 }
 0xef9   :  { %v532_v22 = vpop.permute.xlu0 %531 }
 0xefa   :  { %v534_v37 = vmul.f32 %v532_v22, %v528_v34 }
 0xefc   :  { %536 = vrot.lane.b32.xlu1 %v534_v37, %s2512_s11  ;;  %v701_v37 = vld [vmem:[%s3096_s3 + $0x40] sm:$0xff] }
 0xf6e   :  { %v537_v40 = vpop.permute.xlu1 %536 }
 0xf6f   :  { %v539_v39 = vadd.f32 %v537_v40, %v529_v38  ;;  %v702_v38 = vld [vmem:[%s3096_s3 + $0x48] sm:$0xff]  ;;  %v699_v40 = vld [vmem:[%s3096_s3 + $0x30] sm:$0xff] }
 0xf70   :  { %v2753_v25 = vpack.c.bf16 %v702_v38, %v701_v37 }
 0xf71   :  { %2496 = vtanh.f32 %v539_v39 }
 0xf7e   :  { %v2497_v28 = vpop.eup %2496 }
 0xf7f   :  { %542 = vrot.lane.b32.xlu0 %v2497_v28, %s2513_s12 }
 0xff1   :  { %v543_v42 = vpop.permute.xlu0 %542 }
 0xff2   :  { %v545_v43 = vmul.f32 %v543_v42, %v528_v34  ;;  %v713_v42 = vld [vmem:[%s3096_s3 + $0x90] sm:$0xff] }
 0xff4   :  { %v546_v44 = vpack.c.bf16 %v545_v43, %v545_v43  ;;  %v714_v43 = vld [vmem:[%s3096_s3 + $0x98] sm:$0xff] }
 0xff6   :  { %548 = vrot.lane.b32.xlu1 %v546_v44, %s2514_s13  ;;  %v722_v44 = vld [vmem:[%s3099_s2 + $0x20] sm:$0xff] }
0x1068   :  { %v549_v45 = vpop.permute.xlu1 %548 }
0x1069   :  { %2257 = vmatmul.mubr.msk.bf16.vlgmr.msra.gmra.mxu0 %vm131_vm8, %v549_v45  ;;  %v2776_v45 = vpack.c.bf16 %v714_v43, %v713_v42 }
0x106a   :  { %2268 = vmatprep.mubr.msk.bf16.mxu0 %vm735_vm9, %v2721_v18 }
0x1129   :  { %v587_v46 = vpop.f32.mrf.mxu0 }
0x112a   :  { %v593_v47 = vadd.f32 %v587_v46, %v2599_v29  ;;  %v723_v46 = vld [vmem:[%s3099_s2 + $0x28] sm:$0xff] }
0x112b   :  { %v2258_v48 = vpop.f32.mrf.mxu0 }
0x112c   :  { %v594_v50 = vmul.f32 %v593_v47, %v2611_v41  ;;  %v724_v47 = vld [vmem:[%s3099_s2 + $0x30] sm:$0xff]  ;;  %v725_v48 = vld [vmem:[%s3099_s2 + $0x38] sm:$0xff] }
0x112d   :  { %v590_v51 = vpop.f32.mrf.mxu0 }
0x112e   :  { %2498 = vtanh.f32 %v594_v50  ;;  %v2787_v50 = vpack.c.bf16 %v723_v46, %v722_v44  ;;  %v2789_v51 = vpack.c.bf16 %v725_v48, %v724_v47 }
0x112f   :  { %v2259_v52 = vpop.f32.mrf.mxu0 }
0x113b   :  { %v2499_v53 = vpop.eup %2498 }
0x113c   :  { %v596_v54 = vmul.f32 %v2499_v53, %v2611_v41  ;;  %v2804_v53 = vld [vmem:[%s3096_s3 + $0x28] ss:$0 sm:$0xff] }
0x113e   :  { %v597_v55 = vadd.f32 %v596_v54, %v2614_v49 }
0x1140   :  { %600 = vrot.lane.b32.xlu0 %v597_v55, %s2511_s10  ;;  %v598_v58 = vmul.f32 %v597_v55, %v539_v39  ;;  %v700_v39 = vld [vmem:[%s3096_s3 + $0x38] sm:$0xff] }
0x1141   :  { %v2763_v28 = vpack.c.bf16 %v700_v39, %v699_v40 }
0x11b2   :  { %v601_v56 = vpop.permute.xlu0 %600 }
0x11b3   :  { %v603_v57 = vmul.f32 %v601_v56, %v597_v55 }
0x11b5   :  { %605 = vrot.lane.b32.xlu1 %v603_v57, %s2512_s11 }
0x1227   :  { %v606_v59 = vpop.permute.xlu1 %605 }
0x1228   :  { %v608_v29 = vadd.f32 %v606_v59, %v598_v58 }
0x122a   :  { %2500 = vtanh.f32 %v608_v29 }
0x1237   :  { %v2501_v60 = vpop.eup %2500 }
0x1238   :  { %611 = vrot.lane.b32.xlu0 %v2501_v60, %s2513_s12 }
0x12aa   :  { %v612_v35 = vpop.permute.xlu0 %611 }
0x12ab   :  { %v614_v61 = vmul.f32 %v612_v35, %v597_v55 }
0x12ad   :  { %v615_v62 = vpack.c.bf16 %v614_v61, %v614_v61  ;;  %v711_v61 = vld [vmem:[%s3096_s3 + $0x80] sm:$0xff] }
0x12af   :  { %617 = vrot.lane.b32.xlu1 %v615_v62, %s2514_s13  ;;  %v712_v62 = vld [vmem:[%s3096_s3 + $0x88] sm:$0xff] }
0x1321   :  { %v618_v63 = vpop.permute.xlu1 %617 }
0x1322   :  { %2263 = vmatmul.mubr.msk.bf16.vlgmr.msra.gmra.mxu1 %vm131_vm8, %v618_v63  ;;  %v2820_v63 = vpack.c.bf16 %v712_v62, %v711_v61 }
0x1323   :  { %2278 = vmatprep.mubr.msk.bf16.mxu1 %vm2509_vm4, %v2508_v21 }
0x13e2   :  { %v656_v0 = vpop.f32.mrf.mxu1 }
0x13e3   :  { %v662_v1 = vadd.f32 %v656_v0, %v2607_v36  ;;  %v684_v36 = vld [vmem:[%s3098_s1] sm:$0xff]  ;;  %v2827_v0 = vld [vmem:[%s3096_s3 + $0x50] ss:$0 sm:$0xff] }
0x13e4   :  { %v2264_v2 = vpop.f32.mrf.mxu1 }
0x13e5   :  { %v663_v3 = vmul.f32 %v662_v1, %v2611_v41 }
0x13e6   :  { %v659_v4 = vpop.f32.mrf.mxu1 }
0x13e7   :  { %2502 = vtanh.f32 %v663_v3 }
0x13e8   :  { %v2265_v5 = vpop.f32.mrf.mxu1 }
0x13f4   :  { %v2503_v6 = vpop.eup %2502 }
0x13f5   :  { %v665_v7 = vmul.f32 %v2503_v6, %v2611_v41  ;;  %v696_v41 = vld [vmem:[%s3096_s3 + $0x18] sm:$0x3] }
0x13f6   :  { %v730_v14 = vpack.c.bf16 %v696_v41, %v696_v41 }
0x13f7   :  { %v666_v8 = vadd.f32 %v665_v7, %v2614_v49  ;;  %v697_v49 = vld [vmem:[%s3096_s3 + $0x20] sm:$0xff] }
0x13f8   :  { %v825_v17 = vpack.c.bf16 %v697_v49, %v697_v49  ;;  %2460 = vmatprep.subr.msk.bf16.mxu0 %vm52_vm0, %v730_v14  ;;  %v749_v20 = vsel %vm52_vm0, %v730_v14, 0 }
0x13f9   :  { %669 = vrot.lane.b32.xlu0 %v666_v8, %s2511_s10  ;;  %v667_v11 = vmul.f32 %v666_v8, %v608_v29  ;;  %2267 = vmatpush3.bf16.msra.mxu0 %v749_v20 }
0x13fa   :  { %v830_v24 = vsel %vm135_vm3, %v825_v17, 0  ;;  %2290 = vmatprep.subr.bf16.mxu0 %v2508_v21 }
0x13fb   :  { %2277 = vmatpush3.bf16.msra.mxu1 %v830_v24 }
0x13fc   :  { %2282 = vmatprep.subr.bf16.mxu1 %v2508_v21  ;;  %2269 = vmatmul.mubr.msk.bf16.vlgmr.msra.gmra.mxu0 %vm735_vm9, %v2728_v23 }
0x13fd   :  { %2291 = vmatpush3.bf16.msra.mxu0 %v2776_v45  ;;  %2272 = vmatprep.mubr.msk.bf16.mxu0 %vm735_vm9, %v2787_v50 }
0x13fe   :  { %2292 = vmatprep.subr.bf16.mxu0 %v2508_v21 }
0x1401   :  { %2293 = vmatpush3.bf16.msra.mxu0 %v2820_v63 }
0x1402   :  { %2306 = vmatprep.subr.bf16.mxu0 %v2508_v21 }
0x1404   :  { %2273 = vmatmul.mubr.msk.bf16.gmra.mxu0 %vm735_vm9, %v2789_v51 }
0x1405   :  { %2294 = vmatprep.mubr.msk.bf16.mxu0 %vm2509_vm4, %v2508_v21 }
0x146b   :  { %v670_v9 = vpop.permute.xlu0 %669 }
0x146c   :  { %v672_v10 = vmul.f32 %v670_v9, %v666_v8 }
0x146e   :  { %674 = vrot.lane.b32.xlu1 %v672_v10, %s2512_s11 }
0x1472   :  { %687 = vperm.xlu1 %2472, %v684_v36  }
0x14bc   :  { %v2799_v52 = vpop.f32.mrf.mxu0 }
0x14bd   :  { %v794_v42 = vadd.f32 %v2799_v52, %v2804_v53 }
0x14be   :  { %v785_v54 = vpop.f32.mrf.mxu0 }
0x14bf   :  { %v786_v55 = vadd.f32 %v2804_v53, %v785_v54 }
0x14e0   :  { %v675_v12 = vpop.permute.xlu1 %674 }
0x14e1   :  { %v677_v13 = vadd.f32 %v675_v12, %v667_v11 }
0x14e3   :  { %2504 = vtanh.f32 %v677_v13  ;;  %v2854_v13 = vld [vmem:[%s3096_s3 + $0xa0] ss:$0 sm:$0xff] }
0x14ed   :  { %v688_v31 = vpop.permute.xlu1 %687 }
0x14f0   :  { %v2505_v26 = vpop.eup %2504 }
0x14f1   :  { %680 = vrot.lane.b32.xlu0 %v2505_v26, %s2513_s12 }
0x1563   :  { %v681_v27 = vpop.permute.xlu0 %680 }
0x1564   :  { %v683_v30 = vmul.f32 %v681_v27, %v666_v8  ;;  %v2841_v8 = vpop.f32.mrf.mxu0 }
0x1565   :  { %v797_v62 = vadd.f32 %v2841_v8, %v2804_v53 }
0x1566   :  { %692 = vrot.lane.b32.xlu0 %v683_v30, %s2514_s13  ;;  %v788_v9 = vpop.f32.mrf.mxu0 }
0x1567   :  { %v789_v32 = vadd.f32 %v2804_v53, %v788_v9 }
0x1568   :  { %v2843_v10 = vpop.f32.mrf.mxu0 }
0x156a   :  { %v2845_v36 = vpop.f32.mrf.mxu0 }
0x156c   :  { %v2847_v11 = vpop.f32.mrf.mxu0 }
0x156e   :  { %v2849_v12 = vpop.f32.mrf.mxu0 }
0x15d8   :  { %v693_v33 = vpop.permute.xlu0 %692 }
0x15d9   :  { %v2740_v34 = vsel %vm690_vm10, %v688_v31, %v693_v33 }
0x15da   :  { %v824_v22 = vpack.c.bf16 %v2740_v34, %v2740_v34 }
0x15dc   :  { %2279 = vmatmul.mubr.msk.bf16.vlgmr.msra.gmra.mxu1 %vm131_vm8, %v824_v22 }
0x15dd   :  { %2286 = vmatprep.mubr.msk.bf16.mxu1 %vm2509_vm4, %v2508_v21  ;;  %2283 = vmatpush3.bf16.msra.mxu1 %v2753_v25 }
0x15de   :  { %2284 = vmatprep.subr.bf16.mxu1 %v2508_v21 }
0x15e1   :  { %2285 = vmatpush3.bf16.msra.mxu1 %v2763_v28 }
0x15e2   :  { %2298 = vmatprep.subr.bf16.mxu1 %v2508_v21 }
0x169c   :  { %v866_v56 = vpop.f32.mrf.mxu1 }
0x169d   :  { %v872_v57 = vadd.f32 %v866_v56, %v786_v55 }
0x169e   :  { %v2280_v58 = vpop.f32.mrf.mxu1 }
0x169f   :  { %v873_v59 = vmax.f32 %v872_v57, 0.0 }
0x16a0   :  { %v869_v29 = vpop.f32.mrf.mxu1 }
0x16a1   :  { %v874_v60 = vpack.c.bf16 %v873_v59, %v873_v59 }
0x16a2   :  { %v2281_v35 = vpop.f32.mrf.mxu1 }
0x16a3   :  { %2287 = vmatmul.mubr.msk.bf16.vlgmr.msra.gmra.mxu1 %vm875_vm11, %v874_v60 }
0x16a4   :  { %2299 = vmatpush3.bf16.msra.mxu1 %v2753_v25  ;;  %2302 = vmatprep.mubr.msk.bf16.mxu1 %vm2509_vm4, %v2508_v21 }
0x16a5   :  { %2300 = vmatprep.subr.bf16.mxu1 %v2508_v21 }
0x16a8   :  { %2301 = vmatpush3.bf16.msra.mxu1 %v2763_v28 }
0x16a9   :  { %2314 = vmatprep.subr.bf16.mxu1 %v2508_v21 }
0x1763   :  { %v913_v1 = vpop.f32.mrf.mxu1 }
0x1764   :  { %v914_v2 = vadd.f32 %v2827_v0, %v913_v1 }
0x1765   :  { %v2288_v3 = vpop.f32.mrf.mxu1 }
0x1766   :  { %v2830_v4 = vmax.f32 %v914_v2, 0.0 }
0x1767   :  { %v916_v5 = vpop.f32.mrf.mxu1 }
0x1768   :  { %v920_v6 = vpack.c.bf16 %v2830_v4, %v2830_v4 }
0x1769   :  { %v2289_v7 = vpop.f32.mrf.mxu1 }
0x176a   :  { %2295 = vmatmul.mubr.msk.bf16.vlgmr.msra.gmra.mxu0 %vm875_vm11, %v920_v6 }
0x176b   :  { %2307 = vmatpush3.bf16.msra.mxu0 %v2776_v45  ;;  %2310 = vmatprep.mubr.msk.bf16.mxu0 %vm2509_vm4, %v2508_v21 }
0x176c   :  { %2308 = vmatprep.subr.bf16.mxu0 %v2508_v21 }
0x176f   :  { %2309 = vmatpush3.bf16.msra.mxu0 %v2820_v63 }
0x1770   :  { %2322 = vmatprep.subr.bf16.mxu0 %v2508_v21 }
0x182a   :  { %v958_v41 = vpop.f32.mrf.mxu0 }
0x182b   :  { %v964_v49 = vadd.f32 %v958_v41, %v866_v56 }
0x182c   :  { %v2296_v14 = vpop.f32.mrf.mxu0 }
0x182d   :  { %v965_v15 = vadd.f32 %v2854_v13, %v964_v49 }
0x182e   :  { %v961_v16 = vpop.f32.mrf.mxu0 }
0x182f   :  { %v966_v17 = vadd.f32 %v965_v15, %v789_v32 }
0x1830   :  { %v2297_v19 = vpop.f32.mrf.mxu0 }
0x1831   :  { %v967_v20 = vmax.f32 %v966_v17, 0.0 }
0x1833   :  { %v968_v24 = vpack.c.bf16 %v967_v20, %v967_v20  ;;  %v802_v20 = vadd.f32 %v2804_v53, %v2845_v36 }
0x1835   :  { %2303 = vmatmul.mubr.msk.bf16.vlgmr.msra.gmra.mxu1 %vm875_vm11, %v968_v24 }
0x1836   :  { %2315 = vmatpush3.bf16.msra.mxu1 %v2753_v25  ;;  %2318 = vmatprep.mubr.msk.bf16.mxu1 %vm2509_vm4, %v2508_v21 }
0x1837   :  { %2316 = vmatprep.subr.bf16.mxu1 %v2508_v21 }
0x183a   :  { %2317 = vmatpush3.bf16.msra.mxu1 %v2763_v28 }
0x183b   :  { %2330 = vmatprep.subr.bf16.mxu1 %v2508_v21 }
0x18f5   :  { %v1006_v26 = vpop.f32.mrf.mxu1 }
0x18f6   :  { %v1007_v27 = vadd.f32 %v2827_v0, %v1006_v26 }
0x18f7   :  { %v2304_v30 = vpop.f32.mrf.mxu1 }
0x18f8   :  { %v2866_v31 = vmax.f32 %v1007_v27, 0.0 }
0x18f9   :  { %v1009_v33 = vpop.f32.mrf.mxu1 }
0x18fa   :  { %v1013_v22 = vpack.c.bf16 %v2866_v31, %v2866_v31 }
0x18fb   :  { %v2305_v37 = vpop.f32.mrf.mxu1 }
0x18fc   :  { %2311 = vmatmul.mubr.msk.bf16.vlgmr.msra.gmra.mxu0 %vm875_vm11, %v1013_v22 }
0x18fd   :  { %2323 = vmatpush3.bf16.msra.mxu0 %v2776_v45  ;;  %2326 = vmatprep.mubr.msk.bf16.mxu0 %vm2509_vm4, %v2508_v21 }
0x18fe   :  { %2324 = vmatprep.subr.bf16.mxu0 %v2508_v21 }
0x1901   :  { %2325 = vmatpush3.bf16.msra.mxu0 %v2820_v63 }
0x1902   :  { %2338 = vmatprep.subr.bf16.mxu0 %v2508_v21 }
0x19bc   :  { %v1051_v38 = vpop.f32.mrf.mxu0 }
0x19bd   :  { %v1057_v40 = vadd.f32 %v1051_v38, %v965_v15 }
0x19be   :  { %v2312_v39 = vpop.f32.mrf.mxu0 }
0x19bf   :  { %v1058_v43 = vadd.f32 %v2854_v13, %v1057_v40 }
0x19c0   :  { %v1054_v44 = vpop.f32.mrf.mxu0 }
0x19c1   :  { %v1059_v46 = vadd.f32 %v1058_v43, %v794_v42 }
0x19c2   :  { %v2313_v47 = vpop.f32.mrf.mxu0 }
0x19c3   :  { %v1060_v48 = vmax.f32 %v1059_v46, 0.0 }
0x19c5   :  { %v1061_v54 = vpack.c.bf16 %v1060_v48, %v1060_v48  ;;  %v805_v48 = vadd.f32 %v2804_v53, %v2849_v12 }
0x19c7   :  { %2319 = vmatmul.mubr.msk.bf16.vlgmr.msra.gmra.mxu1 %vm875_vm11, %v1061_v54 }
0x19c8   :  { %2331 = vmatpush3.bf16.msra.mxu1 %v2753_v25  ;;  %2334 = vmatprep.mubr.msk.bf16.mxu1 %vm2509_vm4, %v2508_v21 }
0x19c9   :  { %2332 = vmatprep.subr.bf16.mxu1 %v2508_v21 }
0x19cc   :  { %2333 = vmatpush3.bf16.msra.mxu1 %v2763_v28 }
0x19cd   :  { %2346 = vmatprep.subr.bf16.mxu1 %v2508_v21 }
0x1a87   :  { %v1099_v52 = vpop.f32.mrf.mxu1 }
0x1a88   :  { %v1100_v55 = vadd.f32 %v2827_v0, %v1099_v52 }
0x1a89   :  { %v2320_v56 = vpop.f32.mrf.mxu1 }
0x1a8a   :  { %v2888_v57 = vmax.f32 %v1100_v55, 0.0 }
0x1a8b   :  { %v1102_v58 = vpop.f32.mrf.mxu1 }
0x1a8c   :  { %v1106_v59 = vpack.c.bf16 %v2888_v57, %v2888_v57 }
0x1a8d   :  { %v2321_v29 = vpop.f32.mrf.mxu1 }
0x1a8e   :  { %2327 = vmatmul.mubr.msk.bf16.vlgmr.msra.gmra.mxu0 %vm875_vm11, %v1106_v59 }
0x1a8f   :  { %2339 = vmatpush3.bf16.msra.mxu0 %v2776_v45  ;;  %2342 = vmatprep.mubr.msk.bf16.mxu0 %vm2509_vm4, %v2508_v21 }
0x1a90   :  { %2340 = vmatprep.subr.bf16.mxu0 %v2508_v21 }
0x1a93   :  { %2341 = vmatpush3.bf16.msra.mxu0 %v2820_v63 }
0x1a94   :  { %2354 = vmatprep.subr.bf16.mxu0 %v2508_v21 }
0x1b4e   :  { %v1144_v60 = vpop.f32.mrf.mxu0 }
0x1b4f   :  { %v1150_v35 = vadd.f32 %v1144_v60, %v1058_v43 }
0x1b50   :  { %v2328_v61 = vpop.f32.mrf.mxu0 }
0x1b51   :  { %v1151_v1 = vadd.f32 %v2854_v13, %v1150_v35 }
0x1b52   :  { %v1147_v2 = vpop.f32.mrf.mxu0 }
0x1b53   :  { %v1152_v3 = vadd.f32 %v1151_v1, %v797_v62 }
0x1b54   :  { %v2329_v5 = vpop.f32.mrf.mxu0 }
0x1b55   :  { %v1153_v6 = vmax.f32 %v1152_v3, 0.0 }
0x1b57   :  { %v1154_v7 = vpack.c.bf16 %v1153_v6, %v1153_v6  ;;  %v810_v6 = vadd.f32 %v2843_v10, %v2804_v53  ;;  %v709_v10 = vld [vmem:[%s3096_s3 + $0x70] sm:$0xff] }
0x1b59   :  { %2335 = vmatmul.mubr.msk.bf16.vlgmr.msra.gmra.mxu1 %vm875_vm11, %v1154_v7 }
0x1b5a   :  { %2347 = vmatpush3.bf16.msra.mxu1 %v2753_v25  ;;  %2350 = vmatprep.mubr.msk.bf16.mxu1 %vm2509_vm4, %v2508_v21 }
0x1b5b   :  { %2348 = vmatprep.subr.bf16.mxu1 %v2508_v21 }
0x1b5e   :  { %2349 = vmatpush3.bf16.msra.mxu1 %v2763_v28 }
0x1b5f   :  { %2362 = vmatprep.subr.bf16.mxu1 %v2508_v21 }
0x1c19   :  { %v1192_v8 = vpop.f32.mrf.mxu1 }
0x1c1a   :  { %v1193_v9 = vadd.f32 %v2827_v0, %v1192_v8 }
0x1c1b   :  { %v2336_v41 = vpop.f32.mrf.mxu1 }
0x1c1c   :  { %v2910_v49 = vmax.f32 %v1193_v9, 0.0 }
0x1c1d   :  { %v1195_v14 = vpop.f32.mrf.mxu1 }
0x1c1e   :  { %v1199_v32 = vpack.c.bf16 %v2910_v49, %v2910_v49 }
0x1c1f   :  { %v2337_v15 = vpop.f32.mrf.mxu1 }
0x1c20   :  { %2343 = vmatmul.mubr.msk.bf16.vlgmr.msra.gmra.mxu0 %vm875_vm11, %v1199_v32 }
0x1c21   :  { %2355 = vmatpush3.bf16.msra.mxu0 %v2776_v45  ;;  %2358 = vmatprep.mubr.msk.bf16.mxu0 %vm2509_vm4, %v2508_v21 }
0x1c22   :  { %2356 = vmatprep.subr.bf16.mxu0 %v2508_v21 }
0x1c25   :  { %2357 = vmatpush3.bf16.msra.mxu0 %v2820_v63 }
0x1c26   :  { %2370 = vmatprep.subr.bf16.mxu0 %v2508_v21 }
0x1ce0   :  { %v1237_v16 = vpop.f32.mrf.mxu0 }
0x1ce1   :  { %v1243_v17 = vadd.f32 %v1237_v16, %v1151_v1 }
0x1ce2   :  { %v2344_v19 = vpop.f32.mrf.mxu0 }
0x1ce3   :  { %v1244_v24 = vadd.f32 %v2854_v13, %v1243_v17 }
0x1ce4   :  { %v1240_v26 = vpop.f32.mrf.mxu0 }
0x1ce5   :  { %v1245_v27 = vadd.f32 %v1244_v24, %v802_v20  ;;  %v1571_v26 = vpack.c.bf16 %v2866_v31, %v2830_v4  ;;  %v813_v31 = vadd.f32 %v2847_v11, %v2804_v53  ;;  %v1666_v53 = vld [vmem:[%s3096_s3 + $0xa8] sm:$0xff] }
0x1ce6   :  { %v2345_v30 = vpop.f32.mrf.mxu0 }
0x1ce7   :  { %v1246_v33 = vmax.f32 %v1245_v27, 0.0  ;;  %v1572_v30 = vpack.c.bf16 %v2910_v49, %v2888_v57  ;;  %v1667_v57 = vld [vmem:[%s3096_s3 + $0xb0] sm:$0x3] }
0x1ce8   :  { %v1684_v11 = vpack.c.bf16 %v1667_v57, %v1667_v57 }
0x1ce9   :  { %v1247_v22 = vpack.c.bf16 %v1246_v33, %v1246_v33 }
0x1cea   :  { %v1686_v49 = vsel %vm52_vm0, %v1684_v11, 0 }
0x1ceb   :  { %2351 = vmatmul.mubr.msk.bf16.vlgmr.msra.gmra.mxu1 %vm875_vm11, %v1247_v22 }
0x1cec   :  { %2363 = vmatpush3.bf16.msra.mxu1 %v2753_v25  ;;  %2366 = vmatprep.mubr.msk.bf16.mxu1 %vm2509_vm4, %v2508_v21 }
0x1ced   :  { %2364 = vmatprep.subr.bf16.mxu1 %v2508_v21 }
0x1cf0   :  { %2365 = vmatpush3.bf16.msra.mxu1 %v2763_v28 }
0x1cf1   :  { %2378 = vmatprep.subr.bf16.mxu1 %v2508_v21 }
0x1dab   :  { %v1285_v36 = vpop.f32.mrf.mxu1 }
0x1dac   :  { %v1286_v37 = vadd.f32 %v2827_v0, %v1285_v36 }
0x1dad   :  { %v2352_v38 = vpop.f32.mrf.mxu1 }
0x1dae   :  { %v2932_v40 = vmax.f32 %v1286_v37, 0.0 }
0x1daf   :  { %v1288_v39 = vpop.f32.mrf.mxu1 }
0x1db0   :  { %v1292_v42 = vpack.c.bf16 %v2932_v40, %v2932_v40 }
0x1db1   :  { %v2353_v43 = vpop.f32.mrf.mxu1 }
0x1db2   :  { %2359 = vmatmul.mubr.msk.bf16.vlgmr.msra.gmra.mxu0 %vm875_vm11, %v1292_v42 }
0x1db3   :  { %2371 = vmatpush3.bf16.msra.mxu0 %v2776_v45  ;;  %2374 = vmatprep.mubr.msk.bf16.mxu0 %vm2509_vm4, %v2508_v21 }
0x1db4   :  { %2372 = vmatprep.subr.bf16.mxu0 %v2508_v21 }
0x1db7   :  { %2373 = vmatpush3.bf16.msra.mxu0 %v2820_v63 }
0x1db8   :  { %2386 = vmatprep.subr.bf16.mxu0 %v2508_v21 }
0x1e72   :  { %v1330_v44 = vpop.f32.mrf.mxu0 }
0x1e73   :  { %v1336_v46 = vadd.f32 %v1330_v44, %v1244_v24 }
0x1e74   :  { %v2360_v47 = vpop.f32.mrf.mxu0 }
0x1e75   :  { %v1337_v54 = vadd.f32 %v2854_v13, %v1336_v46 }
0x1e76   :  { %v1333_v52 = vpop.f32.mrf.mxu0 }
0x1e77   :  { %v1338_v55 = vadd.f32 %v1337_v54, %v805_v48  ;;  %v2083_v48 = vld [vmem:[%s3096_s3 + $0x78] ss:$0 sm:$0xff] }
0x1e78   :  { %v2361_v56 = vpop.f32.mrf.mxu0 }
0x1e79   :  { %v1339_v58 = vmax.f32 %v1338_v55, 0.0 }
0x1e7b   :  { %v1340_v59 = vpack.c.bf16 %v1339_v58, %v1339_v58 }
0x1e7d   :  { %2367 = vmatmul.mubr.msk.bf16.vlgmr.msra.gmra.mxu1 %vm875_vm11, %v1340_v59 }
0x1e7e   :  { %2379 = vmatpush3.bf16.msra.mxu1 %v2753_v25  ;;  %2382 = vmatprep.mubr.msk.bf16.mxu1 %vm2509_vm4, %v2508_v21 }
0x1e7f   :  { %2380 = vmatprep.subr.bf16.mxu1 %v2508_v21 }
0x1e82   :  { %2381 = vmatpush3.bf16.msra.mxu1 %v2763_v28 }
0x1e83   :  { %2394 = vmatprep.subr.bf16.mxu1 %v2508_v21 }
0x1f3d   :  { %v1378_v12 = vpop.f32.mrf.mxu1 }
0x1f3e   :  { %v1379_v29 = vadd.f32 %v2827_v0, %v1378_v12 }
0x1f3f   :  { %v2368_v60 = vpop.f32.mrf.mxu1 }
0x1f40   :  { %v1384_v35 = vmax.f32 %v1379_v29, 0.0 }
0x1f41   :  { %v1381_v61 = vpop.f32.mrf.mxu1 }
0x1f42   :  { %v1385_v62 = vpack.c.bf16 %v1384_v35, %v1384_v35  ;;  %v1573_v33 = vpack.c.bf16 %v1384_v35, %v2932_v40 }
0x1f43   :  { %v2369_v1 = vpop.f32.mrf.mxu1 }
0x1f44   :  { %2375 = vmatmul.mubr.msk.bf16.vlgmr.msra.gmra.mxu0 %vm875_vm11, %v1385_v62 }
0x1f45   :  { %2387 = vmatpush3.bf16.msra.mxu0 %v2776_v45  ;;  %2390 = vmatprep.mubr.msk.bf16.mxu0 %vm2509_vm4, %v2508_v21 }
0x1f46   :  { %2388 = vmatprep.subr.bf16.mxu0 %v2508_v21 }
0x1f49   :  { %2389 = vmatpush3.bf16.msra.mxu0 %v2820_v63  ;;  %v708_v63 = vld [vmem:[%s3096_s3 + $0x68] sm:$0xff] }
0x1f4a   :  { %v1576_v32 = vpack.c.bf16 %v709_v10, %v708_v63 }
0x1f4c   :  { %2402 = vmatprep.subr.bf16.mxu0 %v1576_v32 }
0x2004   :  { %v1423_v2 = vpop.f32.mrf.mxu0 }
0x2005   :  { %v1429_v3 = vadd.f32 %v1423_v2, %v1337_v54 }
0x2006   :  { %v2376_v5 = vpop.f32.mrf.mxu0 }
0x2007   :  { %v1430_v7 = vadd.f32 %v2854_v13, %v1429_v3 }
0x2008   :  { %v1426_v8 = vpop.f32.mrf.mxu0 }
0x2009   :  { %v1431_v9 = vadd.f32 %v1430_v7, %v810_v6  ;;  %v1669_v6 = vld [vmem:[%s3096_s3 + $0xc0] sm:$0xff] }
0x200a   :  { %v2377_v41 = vpop.f32.mrf.mxu0 }
0x200b   :  { %v1432_v14 = vmax.f32 %v1431_v9, 0.0 }
0x200d   :  { %v1433_v45 = vpack.c.bf16 %v1432_v14, %v1432_v14 }
0x200f   :  { %2383 = vmatmul.mubr.msk.bf16.vlgmr.msra.gmra.mxu1 %vm875_vm11, %v1433_v45 }
0x2010   :  { %2395 = vmatpush3.bf16.msra.mxu1 %v2753_v25  ;;  %2398 = vmatprep.mubr.msk.bf16.mxu1 %vm2509_vm4, %v2508_v21 }
0x2011   :  { %2396 = vmatprep.subr.bf16.mxu1 %v2508_v21  ;;  %v706_v21 = vld [vmem:[%s3096_s3 + $0x58] sm:$0xff] }
0x2014   :  { %2397 = vmatpush3.bf16.msra.mxu1 %v2763_v28  ;;  %v707_v28 = vld [vmem:[%s3096_s3 + $0x60] sm:$0xff] }
0x2015   :  { %v1575_v24 = vpack.c.bf16 %v707_v28, %v706_v21  ;;  %2461 = vmatprep.subr.msk.bf16.mxu1 %vm52_vm0, %v1684_v11 }
0x20cf   :  { %v1471_v15 = vpop.f32.mrf.mxu1 }
0x20d0   :  { %v1472_v25 = vadd.f32 %v2827_v0, %v1471_v15 }
0x20d1   :  { %v2384_v16 = vpop.f32.mrf.mxu1 }
0x20d2   :  { %v1477_v17 = vmax.f32 %v1472_v25, 0.0 }
0x20d3   :  { %v1474_v19 = vpop.f32.mrf.mxu1 }
0x20d4   :  { %v1478_v20 = vpack.c.bf16 %v1477_v17, %v1477_v17 }
0x20d5   :  { %v2385_v27 = vpop.f32.mrf.mxu1 }
0x20d6   :  { %2391 = vmatmul.mubr.msk.bf16.vlgmr.msra.gmra.mxu0 %vm875_vm11, %v1478_v20 }
0x20d7   :  { %2403 = vmatpush3.bf16.msra.mxu0 %v1576_v32  ;;  %2406 = vmatprep.mubr.msk.bf16.mxu0 %vm875_vm11, %v1571_v26 }
0x20d8   :  { %2404 = vmatprep.subr.bf16.mxu0 %v1575_v24 }
0x20db   :  { %2405 = vmatpush3.bf16.msra.mxu0 %v1575_v24 }
0x20de   :  { %2407 = vmatmul.mubr.msk.bf16.vlgmr.msra.gmra.mxu0 %vm875_vm11, %v1572_v30 }
0x20df   :  { %2410 = vmatprep.mubr.msk.bf16.mxu0 %vm875_vm11, %v1573_v33 }
0x2196   :  { %v1516_v22 = vpop.f32.mrf.mxu0 }
0x2197   :  { %v1522_v36 = vadd.f32 %v1516_v22, %v1430_v7  ;;  %v1670_v7 = vld [vmem:[%s3096_s3 + $0xc8] sm:$0xff] }
0x2198   :  { %v2392_v4 = vpop.f32.mrf.mxu0  ;;  %v1857_v8 = vpack.c.bf16 %v1670_v7, %v1669_v6  ;;  %v2097_v7 = vld [vmem:[%s3096_s3 + $0xe0] ss:$0 sm:$0xff] }
0x2199   :  { %v1523_v37 = vadd.f32 %v2854_v13, %v1522_v36  ;;  %v1683_v13 = vpack.c.bf16 %v1666_v53, %v1666_v53  ;;  %v2096_v4 = vld [vmem:[%s3096_s3 + $0xb8] ss:$0 sm:$0xff] }
0x219a   :  { %v1519_v38 = vpop.f32.mrf.mxu0 }
0x219b   :  { %v1524_v39 = vadd.f32 %v1523_v37, %v813_v31  ;;  %2462 = vmatprep.subr.msk.bf16.mxu0 %vm135_vm3, %v1683_v13  ;;  %v1766_v40 = vsel %vm135_vm3, %v1683_v13, 0 }
0x219c   :  { %v2393_v42 = vpop.f32.mrf.mxu0  ;;  %2425 = vmatpush3.bf16.msra.mxu0 %v1766_v40 }
0x219d   :  { %v1525_v43 = vmax.f32 %v1524_v39, 0.0 }
0x219f   :  { %v1526_v44 = vpack.c.bf16 %v1525_v43, %v1525_v43 }
0x21a1   :  { %2399 = vmatmul.mubr.msk.bf16.vlgmr.msra.gmra.mxu1 %vm875_vm11, %v1526_v44 }
0x21a2   :  { %2416 = vmatprep.mubr.msk.bf16.mxu1 %vm735_vm9, %v2721_v18  ;;  %2415 = vmatpush3.bf16.msra.mxu1 %v1686_v49  ;;  %v2408_v18 = vpop.f32.mrf.mxu0 }
0x21a3   :  { %v1636_v12 = vadd.f32 %v2408_v18, %v2083_v48 }
0x21a4   :  { %v1627_v46 = vpop.f32.mrf.mxu0 }
0x21a5   :  { %v1628_v52 = vadd.f32 %v2083_v48, %v1627_v46  ;;  %v1676_v46 = vld [vmem:[%s3096_s3 + $0xf8] sm:$0xff] }
0x21a6   :  { %v2409_v47 = vpop.f32.mrf.mxu0 }
0x21a7   :  { %v1658_v56 = vadd.f32 %v1628_v52, %v2740_v34  ;;  %v1639_v1 = vadd.f32 %v2409_v47, %v2083_v48  ;;  %v1671_v34 = vld [vmem:[%s3096_s3 + $0xd0] sm:$0xff]  ;;  %v1677_v47 = vld [vmem:[%s3096_s3 + $0x100] sm:$0xff] }
0x21a8   :  { %v1630_v54 = vpop.f32.mrf.mxu0  ;;  %v1675_v52 = vld [vmem:[%s3096_s3 + $0xf0] sm:$0xff] }
0x21a9   :  { %2417 = vmatmul.mubr.msk.bf16.vlgmr.msra.gmra.mxu1 %vm735_vm9, %v2728_v23  ;;  %v1631_v55 = vadd.f32 %v2083_v48, %v1630_v54  ;;  %v1674_v54 = vld [vmem:[%s3096_s3 + $0xe8] sm:$0xff] }
0x21aa   :  { %2420 = vmatprep.mubr.msk.bf16.mxu1 %vm735_vm9, %v2787_v50 }
0x21ab   :  { %v1659_v23 = vadd.f32 %v1658_v56, %v1631_v55  ;;  %v1952_v55 = vpack.c.bf16 %v1675_v52, %v1674_v54 }
0x21ad   :  { %v1660_v60 = vadd.f32 %v1659_v23, %v1636_v12  ;;  %v1679_v61 = vpack.c.bf16 %v1659_v23, %v1658_v56 }
0x21af   :  { %v1661_v2 = vadd.f32 %v1660_v60, %v1639_v1 }
0x21b1   :  { %2421 = vmatmul.mubr.msk.bf16.gmra.mxu1 %vm735_vm9, %v2789_v51  ;;  %v1680_v3 = vpack.c.bf16 %v1661_v2, %v1660_v60 }
0x2261   :  { %v1564_v58 = vpop.f32.mrf.mxu1 }
0x2262   :  { %v1565_v59 = vadd.f32 %v2827_v0, %v1564_v58  ;;  %v1672_v0 = vld [vmem:[%s3096_s3 + $0xd8] sm:$0xff] }
0x2263   :  { %v2400_v50 = vpop.f32.mrf.mxu1  ;;  %v1858_v5 = vpack.c.bf16 %v1672_v0, %v1671_v34 }
0x2264   :  { %v1570_v29 = vmax.f32 %v1565_v59, 0.0 }
0x2265   :  { %v1567_v51 = vpop.f32.mrf.mxu1  ;;  %2434 = vmatprep.subr.bf16.mxu1 %v1858_v5 }
0x2266   :  { %v1574_v35 = vpack.c.bf16 %v1570_v29, %v1477_v17  ;;  %2435 = vmatpush3.bf16.msra.mxu1 %v1858_v5 }
0x2267   :  { %v2401_v62 = vpop.f32.mrf.mxu1  ;;  %2436 = vmatprep.subr.bf16.mxu1 %v1857_v8 }
0x2268   :  { %2411 = vmatmul.mubr.msk.bf16.gmra.mxu0 %vm875_vm11, %v1574_v35 }
0x2269   :  { %2426 = vmatprep.mubr.msk.bf16.mxu0 %vm131_vm8, %v1679_v61  ;;  %v2418_v41 = vpop.f32.mrf.mxu1 }
0x226a   :  { %2437 = vmatpush3.bf16.msra.mxu1 %v1857_v8 }
0x226b   :  { %v1722_v10 = vpop.f32.mrf.mxu1 }
0x226d   :  { %v2419_v21 = vpop.f32.mrf.mxu1 }
0x226f   :  { %v1725_v22 = vpop.f32.mrf.mxu1 }
0x2270   :  { %2427 = vmatmul.mubr.msk.bf16.vlgmr.msra.gmra.mxu0 %vm131_vm8, %v1680_v3 }
0x2271   :  { %v2422_v56 = vpop.f32.mrf.mxu1 }
0x2273   :  { %v1738_v58 = vpop.f32.mrf.mxu1 }
0x2275   :  { %v2423_v59 = vpop.f32.mrf.mxu1 }
0x2277   :  { %v1741_v60 = vpop.f32.mrf.mxu1 }
0x2328   :  { %v2412_v9 = vpop.f32.mrf.mxu0 }
0x2329   :  { %v1652_v28 = vadd.f32 %v2412_v9, %v2083_v48 }
0x232a   :  { %v1643_v14 = vpop.f32.mrf.mxu0 }
0x232b   :  { %v1644_v45 = vadd.f32 %v2083_v48, %v1643_v14 }
0x232c   :  { %v2413_v63 = vpop.f32.mrf.mxu0 }
0x232d   :  { %v1662_v15 = vadd.f32 %v1661_v2, %v1644_v45  ;;  %v1655_v20 = vadd.f32 %v2413_v63, %v2083_v48 }
0x232e   :  { %v1646_v32 = vpop.f32.mrf.mxu0 }
0x232f   :  { %v1647_v25 = vadd.f32 %v2083_v48, %v1646_v32  ;;  %v1953_v48 = vpack.c.bf16 %v1677_v47, %v1676_v46 }
0x2330   :  { %v2428_v16 = vpop.f32.mrf.mxu0 }
0x2331   :  { %v1663_v17 = vadd.f32 %v1662_v15, %v1647_v25  ;;  %v1811_v30 = vadd.f32 %v2428_v16, %v2418_v41  ;;  %2446 = vmatprep.subr.bf16.mxu0 %v1953_v48 }
0x2332   :  { %v1802_v19 = vpop.f32.mrf.mxu0  ;;  %2447 = vmatpush3.bf16.msra.mxu0 %v1953_v48 }
0x2333   :  { %v1664_v24 = vadd.f32 %v1663_v17, %v1652_v28  ;;  %v1681_v26 = vpack.c.bf16 %v1663_v17, %v1662_v15  ;;  %v1803_v27 = vadd.f32 %v1802_v19, %v1722_v10  ;;  %v1839_v44 = vadd.f32 %v2096_v4, %v1811_v30  ;;  %2448 = vmatprep.subr.bf16.mxu0 %v1952_v55  ;;  %v2102_v30 = vld [vmem:[%s3096_s3 + $0x108] ss:$0 sm:$0xff] }
0x2334   :  { %v2429_v33 = vpop.f32.mrf.mxu0 }
0x2335   :  { %v1665_v36 = vadd.f32 %v1664_v24, %v1655_v20  ;;  %v1814_v31 = vadd.f32 %v2429_v33, %v2419_v21  ;;  %2430 = vmatprep.mubr.msk.bf16.mxu0 %vm131_vm8, %v1681_v26  ;;  %v1837_v39 = vadd.f32 %v2096_v4, %v1803_v27  ;;  %v1847_v49 = vmax.f32 %v1839_v44, 0.0 }
0x2336   :  { %v1805_v37 = vpop.f32.mrf.mxu0  ;;  %2449 = vmatpush3.bf16.msra.mxu0 %v1952_v55 }
0x2337   :  { %v1682_v38 = vpack.c.bf16 %v1665_v36, %v1664_v24  ;;  %v1840_v42 = vadd.f32 %v2096_v4, %v1814_v31  ;;  %v1806_v43 = vadd.f32 %v1805_v37, %v1725_v22  ;;  %v1845_v11 = vmax.f32 %v1837_v39, 0.0 }
0x2339   :  { %v1838_v57 = vadd.f32 %v2096_v4, %v1806_v43  ;;  %2431 = vmatmul.mubr.msk.bf16.gmra.mxu0 %vm131_vm8, %v1682_v38  ;;  %v1848_v53 = vmax.f32 %v1840_v42, 0.0 }
0x233b   :  { %v1846_v13 = vmax.f32 %v1838_v57, 0.0  ;;  %v1854_v18 = vpack.c.bf16 %v1848_v53, %v1847_v49 }
0x233d   :  { %v1853_v40 = vpack.c.bf16 %v1846_v13, %v1845_v11 }
0x233f   :  { %2438 = vmatprep.mubr.msk.bf16.mxu1 %vm875_vm11, %v1853_v40 }
0x2340   :  { %2439 = vmatmul.mubr.msk.bf16.vlgmr.msra.gmra.mxu1 %vm875_vm11, %v1854_v18 }
0x23f9   :  { %v2432_v23 = vpop.f32.mrf.mxu0 }
0x23fa   :  { %v1827_v29 = vadd.f32 %v2432_v23, %v2422_v56 }
0x23fb   :  { %v1818_v50 = vpop.f32.mrf.mxu0 }
0x23fc   :  { %v1819_v12 = vadd.f32 %v1818_v50, %v1738_v58  ;;  %v1843_v34 = vadd.f32 %v2096_v4, %v1827_v29 }
0x23fd   :  { %v2433_v51 = vpop.f32.mrf.mxu0 }
0x23fe   :  { %v1830_v35 = vadd.f32 %v2433_v51, %v2423_v59  ;;  %v1841_v62 = vadd.f32 %v2096_v4, %v1819_v12  ;;  %v1851_v14 = vmax.f32 %v1843_v34, 0.0 }
0x23ff   :  { %v1821_v61 = vpop.f32.mrf.mxu0 }
0x2400   :  { %v1844_v1 = vadd.f32 %v2096_v4, %v1830_v35  ;;  %v1822_v2 = vadd.f32 %v1821_v61, %v1741_v60  ;;  %v2440_v3 = vpop.f32.mrf.mxu1  ;;  %v1849_v8 = vmax.f32 %v1841_v62, 0.0 }
0x2401   :  { %v1918_v32 = vadd.f32 %v2440_v3, %v2097_v7 }
0x2402   :  { %v1842_v0 = vadd.f32 %v2096_v4, %v1822_v2  ;;  %v1909_v5 = vpop.f32.mrf.mxu1  ;;  %v1852_v6 = vmax.f32 %v1844_v1, 0.0 }
0x2403   :  { %v1910_v45 = vadd.f32 %v2097_v7, %v1909_v5  ;;  %v1942_v19 = vmax.f32 %v1918_v32, 0.0 }
0x2404   :  { %v1850_v9 = vmax.f32 %v1842_v0, 0.0  ;;  %v2441_v41 = vpop.f32.mrf.mxu1  ;;  %v1856_v25 = vpack.c.bf16 %v1852_v6, %v1851_v14 }
0x2405   :  { %v1921_v63 = vadd.f32 %v2441_v41, %v2097_v7  ;;  %v1940_v28 = vmax.f32 %v1910_v45, 0.0 }
0x2406   :  { %v1855_v10 = vpack.c.bf16 %v1850_v9, %v1849_v8  ;;  %v1912_v15 = vpop.f32.mrf.mxu1 }
0x2407   :  { %v1913_v16 = vadd.f32 %v2097_v7, %v1912_v15  ;;  %v1943_v21 = vmax.f32 %v1921_v63, 0.0 }
0x2408   :  { %2442 = vmatprep.mubr.msk.bf16.mxu1 %vm875_vm11, %v1855_v10 }
0x2409   :  { %v1941_v17 = vmax.f32 %v1913_v16, 0.0  ;;  %2443 = vmatmul.mubr.msk.bf16.gmra.mxu1 %vm875_vm11, %v1856_v25  ;;  %v1949_v24 = vpack.c.bf16 %v1943_v21, %v1942_v19 }
0x240b   :  { %v1948_v20 = vpack.c.bf16 %v1941_v17, %v1940_v28 }
0x240d   :  { %2450 = vmatprep.mubr.msk.bf16.mxu0 %vm875_vm11, %v1948_v20 }
0x240e   :  { %2451 = vmatmul.mubr.msk.bf16.vlgmr.msra.gmra.mxu0 %vm875_vm11, %v1949_v24 }
0x24c9   :  { %v2444_v26 = vpop.f32.mrf.mxu1 }
0x24ca   :  { %v1934_v31 = vadd.f32 %v2444_v26, %v2097_v7 }
0x24cb   :  { %v1925_v27 = vpop.f32.mrf.mxu1 }
0x24cc   :  { %v1926_v22 = vadd.f32 %v2097_v7, %v1925_v27  ;;  %v1946_v13 = vmax.f32 %v1934_v31, 0.0 }
0x24cd   :  { %v2445_v33 = vpop.f32.mrf.mxu1 }
0x24ce   :  { %v1937_v36 = vadd.f32 %v2445_v33, %v2097_v7  ;;  %v2452_v4 = vpop.f32.mrf.mxu0  ;;  %v1944_v57 = vmax.f32 %v1926_v22, 0.0 }
0x24cf   :  { %v2013_v37 = vadd.f32 %v2452_v4, %v2102_v30  ;;  %v1928_v38 = vpop.f32.mrf.mxu1 }
0x24d0   :  { %v1929_v39 = vadd.f32 %v2097_v7, %v1928_v38  ;;  %v2004_v42 = vpop.f32.mrf.mxu0  ;;  %v1947_v43 = vmax.f32 %v1937_v36, 0.0 }
0x24d1   :  { %2038 = vst.msk [vmem:[%s3100_s4 + $0x10] sm:$0xff] %vm2035_vm12, %v2013_v37  ;;  %v2005_v44 = vadd.f32 %v2102_v30, %v2004_v42 }
0x24d2   :  { %v1945_v53 = vmax.f32 %v1929_v39, 0.0  ;;  %v2453_v11 = vpop.f32.mrf.mxu0  ;;  %v1951_v46 = vpack.c.bf16 %v1947_v43, %v1946_v13 }
0x24d3   :  { %2036 = vst.msk [vmem:[%s3100_s4] sm:$0xff] %vm2035_vm12, %v2005_v44  ;;  %v2016_v49 = vadd.f32 %v2453_v11, %v2102_v30 }
0x24d4   :  { %v1950_v40 = vpack.c.bf16 %v1945_v53, %v1944_v57  ;;  %v2007_v18 = vpop.f32.mrf.mxu0 }
0x24d5   :  { %2039 = vst.msk [vmem:[%s3100_s4 + $0x18] sm:$0xff] %vm2035_vm12, %v2016_v49  ;;  %v2008_v47 = vadd.f32 %v2102_v30, %v2007_v18 }
0x24d6   :  { %2454 = vmatprep.mubr.msk.bf16.mxu0 %vm875_vm11, %v1950_v40 }
0x24d7   :  { %2037 = vst.msk [vmem:[%s3100_s4 + $0x8] sm:$0xff] %vm2035_vm12, %v2008_v47  ;;  %2455 = vmatmul.mubr.msk.bf16.gmra.mxu0 %vm875_vm11, %v1951_v46 }
0x2597   :  { %v2456_v48 = vpop.f32.mrf.mxu0 }
0x2598   :  { %v2029_v54 = vadd.f32 %v2456_v48, %v2102_v30 }
0x2599   :  { %v2020_v52 = vpop.f32.mrf.mxu0 }
0x259a   :  { %2042 = vst.msk [vmem:[%s3100_s4 + $0x30] sm:$0xff] %vm2035_vm12, %v2029_v54  ;;  %v2021_v55 = vadd.f32 %v2102_v30, %v2020_v52 }
0x259b   :  { %v2457_v56 = vpop.f32.mrf.mxu0 }
0x259c   :  { %2040 = vst.msk [vmem:[%s3100_s4 + $0x20] sm:$0xff] %vm2035_vm12, %v2021_v55  ;;  %v2032_v58 = vadd.f32 %v2457_v56, %v2102_v30 }
0x259d   :  { %v2023_v23 = vpop.f32.mrf.mxu0 }
0x259e   :  { %2043 = vst.msk [vmem:[%s3100_s4 + $0x38] sm:$0xff] %vm2035_vm12, %v2032_v58  ;;  %v2024_v59 = vadd.f32 %v2102_v30, %v2023_v23 }
0x25a0   :  { %2041 = vst.msk [vmem:[%s3100_s4 + $0x28] sm:$0xff] %vm2035_vm12, %v2024_v59 }

</bundles_post_ra>
